<compile_context>
chip_gen: v7x
topology: tpu7x:2x2x1
jax: 0.10.0
libtpu: 0.0.40
codegen_flags: <defaults>
</compile_context>

<pallas_src>
import functools
import math

import jax
import jax.numpy as jnp
from jax import lax
from jax.experimental import pallas as pl
from jax.experimental.pallas import tpu as pltpu

# ---- model hyper-parameters (module defaults) -------------------------------
INPUT_DIM = 13
NUM_CLASSES = 9
D_MODEL = 64
N_HEAD = 2
N_LAYERS = 5
D_INNER = 128
HEAD_DIM = D_MODEL // N_HEAD
LN_EPS = 1e-5
C_PAD = 128            # lane-dense padded class dimension (multiple of 128)
NEG_BIG = -1e30        # bias for padded class columns -> exp() underflows to 0
# TODO(synk): dropout (p=0.01799...) is omitted — inference semantics (eval mode).


# ------------------------------- Pallas kernel -------------------------------
def _transformer_kernel(
    x_ref,                                  # (BB*T, INPUT_DIM)
    inw_ref, inb_ref,                       # (INPUT_DIM, dm), (1, dm)
    wqkv_ref, bqkv_ref,                     # (L, dm, 3dm), (L, 1, 3dm)
    wo_ref, bo_ref,                         # (L, dm, dm), (L, 1, dm)
    g1_ref, be1_ref,                        # (L, 1, dm) x2
    w1_ref, b1_ref,                         # (L, dm, d_inner), (L, 1, d_inner)
    w2_ref, b2_ref,                         # (L, d_inner, dm), (L, 1, dm)
    g2_ref, be2_ref,                        # (L, 1, dm) x2
    gf_ref, bf_ref,                         # (1, dm) x2
    outw_ref, outb_ref,                     # (dm, C_PAD), (1, C_PAD)
    o_ref,                                  # (BB, C_PAD)
    *, seq_len,
):
    rows = x_ref.shape[0]                   # BB * T
    bb = rows // seq_len
    scale = 1.0 / math.sqrt(HEAD_DIM)

    def layernorm(y, g, b):
        mu = jnp.mean(y, axis=-1, keepdims=True)
        var = jnp.mean((y - mu) ** 2, axis=-1, keepdims=True)
        return (y - mu) * lax.rsqrt(var + LN_EPS) * g + b

    # input linear + relu on all BB*T rows at once
    h = jnp.dot(x_ref[...], inw_ref[...],
                preferred_element_type=jnp.float32) + inb_ref[...]
    h = jnp.maximum(h, 0.0)                 # (BB*T, dm)

    def layer_body(l, h):
        # ---------------- multi-head self attention ----------------
        qkv = jnp.dot(h, wqkv_ref[l],
                      preferred_element_type=jnp.float32) + bqkv_ref[l]
        q3 = qkv[:, 0 * D_MODEL:1 * D_MODEL].reshape(bb, seq_len, D_MODEL) * scale
        k3 = qkv[:, 1 * D_MODEL:2 * D_MODEL].reshape(bb, seq_len, D_MODEL)
        v3 = qkv[:, 2 * D_MODEL:3 * D_MODEL].reshape(bb, seq_len, D_MODEL)

        heads = []
        for hh in range(N_HEAD):            # static unroll (N_HEAD = 2)
            s, e = hh * HEAD_DIM, (hh + 1) * HEAD_DIM
            # batched scores, no explicit transpose
            sc = jnp.einsum('bqd,bkd->bqk', q3[:, :, s:e], k3[:, :, s:e],
                            preferred_element_type=jnp.float32)   # (BB, T, T)
            sc = sc - jnp.max(sc, axis=-1, keepdims=True)
            p = jnp.exp(sc)
            p = p * pl.reciprocal(jnp.sum(p, axis=-1, keepdims=True), approx=True)
            heads.append(jnp.einsum('bqk,bkd->bqd', p, v3[:, :, s:e],
                                    preferred_element_type=jnp.float32))
        # concat heads along lanes -> single Wo projection
        ctx = jnp.concatenate(heads, axis=-1).reshape(rows, D_MODEL)
        attn = jnp.dot(ctx, wo_ref[l],
                       preferred_element_type=jnp.float32) + bo_ref[l]

        h = layernorm(h + attn, g1_ref[l], be1_ref[l])

        # ---------------- feed-forward ----------------
        ff = jnp.dot(h, w1_ref[l], preferred_element_type=jnp.float32) + b1_ref[l]
        ff = jnp.maximum(ff, 0.0)
        ff = jnp.dot(ff, w2_ref[l], preferred_element_type=jnp.float32) + b2_ref[l]

        return layernorm(h + ff, g2_ref[l], be2_ref[l])

    h = lax.fori_loop(0, N_LAYERS, layer_body, h)

    # final encoder LayerNorm
    h = layernorm(h, gf_ref[...], bf_ref[...])

    # max-pool over sequence, relu, output linear (lane-dense), log_softmax
    pooled = jnp.max(h.reshape(bb, seq_len, D_MODEL), axis=1)      # (BB, dm)
    pooled = jnp.maximum(pooled, 0.0)
    logits = jnp.dot(pooled, outw_ref[...],
                     preferred_element_type=jnp.float32) + outb_ref[...]  # (BB, C_PAD)
    m = jnp.max(logits, axis=-1, keepdims=True)
    lse = m + jnp.log(jnp.sum(jnp.exp(logits - m), axis=-1, keepdims=True))
    o_ref[...] = logits - lse                                      # padded cols sliced off outside


# ------------------------------- wrapper --------------------------------------
def transformer_model(x, p, *, block_b=64):
    B, T, F = x.shape
    assert F == INPUT_DIM

    # Batch blocking: as many batch rows per grid step as reasonable; keep the
    # grid >= 2 steps for large B so megacore / 2-TC chips shard the batch axis.
    if B <= block_b:
        bb = B
        b_pad = B
    else:
        bb = block_b
        b_pad = pl.cdiv(B, bb) * bb

    xp = x
    if b_pad != B:
        xp = jnp.concatenate(
            [x, jnp.zeros((b_pad - B, T, F), x.dtype)], axis=0)
    x2 = xp.reshape(b_pad * T, F)           # fold batch*seq into the row dim

    # lane-dense output weights: zero-pad classes 9 -> 128, -1e30 bias on pads
    outw = jnp.zeros((D_MODEL, C_PAD), jnp.float32).at[:, :NUM_CLASSES].set(p["out_w"])
    outb = jnp.full((1, C_PAD), NEG_BIG, jnp.float32).at[:, :NUM_CLASSES].set(p["out_b"])

    weights = [
        p["in_w"], p["in_b"],
        p["wqkv"], p["bqkv"], p["wo"], p["bo"],
        p["g1"], p["be1"], p["w1"], p["b1"], p["w2"], p["b2"],
        p["g2"], p["be2"], p["gf"], p["bf"],
        outw, outb,
    ]

    def full_spec(a):
        nd = a.ndim
        return pl.BlockSpec(a.shape, lambda b, _nd=nd: (0,) * _nd)

    in_specs = [pl.BlockSpec((bb * T, F), lambda b: (b, 0))]
    in_specs += [full_spec(a) for a in weights]

    kernel = functools.partial(_transformer_kernel, seq_len=T)

    out = pl.pallas_call(
        kernel,
        out_shape=jax.ShapeDtypeStruct((b_pad, C_PAD), jnp.float32),
        grid=(b_pad // bb,),
        in_specs=in_specs,
        out_specs=pl.BlockSpec((bb, C_PAD), lambda b: (b, 0)),
        compiler_params=pltpu.CompilerParams(
            dimension_semantics=("parallel",)),
    )(x2, *weights)
    return out[:B, :NUM_CLASSES]


# ------------------------- deterministic parameter init -----------------------
def init_params(key):
    ks = jax.random.split(key, 32)
    n = iter(range(32))
    r = lambda shape, scale=0.1: scale * jax.random.normal(ks[next(n)], shape, jnp.float32)
    p = {
        "in_w": r((INPUT_DIM, D_MODEL)),
        "in_b": r((1, D_MODEL)),
        "wqkv": r((N_LAYERS, D_MODEL, 3 * D_MODEL)),
        "bqkv": r((N_LAYERS, 1, 3 * D_MODEL), 0.02),
        "wo":   r((N_LAYERS, D_MODEL, D_MODEL)),
        "bo":   r((N_LAYERS, 1, D_MODEL), 0.02),
        "g1":   jnp.ones((N_LAYERS, 1, D_MODEL), jnp.float32),
        "be1":  jnp.zeros((N_LAYERS, 1, D_MODEL), jnp.float32),
        "w1":   r((N_LAYERS, D_MODEL, D_INNER)),
        "b1":   r((N_LAYERS, 1, D_INNER), 0.02),
        "w2":   r((N_LAYERS, D_INNER, D_MODEL)),
        "b2":   r((N_LAYERS, 1, D_MODEL), 0.02),
        "g2":   jnp.ones((N_LAYERS, 1, D_MODEL), jnp.float32),
        "be2":  jnp.zeros((N_LAYERS, 1, D_MODEL), jnp.float32),
        "gf":   jnp.ones((1, D_MODEL), jnp.float32),
        "bf":   jnp.zeros((1, D_MODEL), jnp.float32),
        "out_w": r((D_MODEL, NUM_CLASSES)),
        "out_b": r((1, NUM_CLASSES), 0.02),
    }
    return p


# ------------------------------ pure-JAX reference ----------------------------
def reference(x, p):
    B, T, _ = x.shape

    def ln(y, g, b):
        mu = y.mean(-1, keepdims=True)
        var = ((y - mu) ** 2).mean(-1, keepdims=True)
        return (y - mu) * jax.lax.rsqrt(var + LN_EPS) * g + b

    h = jax.nn.relu(x @ p["in_w"] + p["in_b"])
    for l in range(N_LAYERS):
        qkv = h @ p["wqkv"][l] + p["bqkv"][l]
        q, k, v = jnp.split(qkv, 3, axis=-1)
        sh = lambda z: z.reshape(B, T, N_HEAD, HEAD_DIM).transpose(0, 2, 1, 3)
        qh, kh, vh = sh(q), sh(k), sh(v)
        sc = (qh / math.sqrt(HEAD_DIM)) @ kh.transpose(0, 1, 3, 2)
        pr = jax.nn.softmax(sc, axis=-1)
        o = (pr @ vh).transpose(0, 2, 1, 3).reshape(B, T, D_MODEL)
        attn = o @ p["wo"][l] + p["bo"][l]
        h = ln(h + attn, p["g1"][l], p["be1"][l])
        ff = jax.nn.relu(h @ p["w1"][l] + p["b1"][l]) @ p["w2"][l] + p["b2"][l]
        h = ln(h + ff, p["g2"][l], p["be2"][l])
    h = ln(h, p["gf"], p["bf"])
    pooled = jax.nn.relu(h.max(axis=1))
    logits = pooled @ p["out_w"] + p["out_b"]
    return jax.nn.log_softmax(logits, axis=-1)


if __name__ == "__main__":
    B, T = 2, 8
    x = jax.random.normal(jax.random.PRNGKey(0), (B, T, INPUT_DIM), jnp.float32)
    params = init_params(jax.random.PRNGKey(1))

    out = transformer_model(x, params)
    out = jax.block_until_ready(out)

    assert out.shape == (B, NUM_CLASSES), out.shape
    ref = reference(x, params)
    assert jnp.allclose(out, ref, atol=2e-3, rtol=2e-3), (
        "max abs diff %g" % float(jnp.max(jnp.abs(out - ref))))

    print("KERNEL_OK")
</pallas_src>

<mosaic_0001>
module attributes {stable_mosaic.version = 11 : i64} {
  func.func @_transformer_kernel(%arg0: i32, %arg1: memref<16x13xf32, #tpu.memory_space<vmem>>, %arg2: memref<13x64xf32, #tpu.memory_space<vmem>>, %arg3: memref<1x64xf32, #tpu.memory_space<vmem>>, %arg4: memref<5x64x192xf32, #tpu.memory_space<vmem>>, %arg5: memref<5x1x192xf32, #tpu.memory_space<vmem>>, %arg6: memref<5x64x64xf32, #tpu.memory_space<vmem>>, %arg7: memref<5x1x64xf32, #tpu.memory_space<vmem>>, %arg8: memref<5x1x64xf32, #tpu.memory_space<vmem>>, %arg9: memref<5x1x64xf32, #tpu.memory_space<vmem>>, %arg10: memref<5x64x128xf32, #tpu.memory_space<vmem>>, %arg11: memref<5x1x128xf32, #tpu.memory_space<vmem>>, %arg12: memref<5x128x64xf32, #tpu.memory_space<vmem>>, %arg13: memref<5x1x64xf32, #tpu.memory_space<vmem>>, %arg14: memref<5x1x64xf32, #tpu.memory_space<vmem>>, %arg15: memref<5x1x64xf32, #tpu.memory_space<vmem>>, %arg16: memref<1x64xf32, #tpu.memory_space<vmem>>, %arg17: memref<1x64xf32, #tpu.memory_space<vmem>>, %arg18: memref<64x128xf32, #tpu.memory_space<vmem>>, %arg19: memref<1x128xf32, #tpu.memory_space<vmem>>, %arg20: memref<2x128xf32, #tpu.memory_space<vmem>>) attributes {dimension_semantics = [#tpu.dimension_semantics<parallel>], iteration_bounds = array<i64: 1>, scalar_prefetch = 0 : i64, scratch_operands = 0 : i64, tpu.core_type = #tpu.core_type<tc>, window_params = [{transform_indices = @transform_0, window_bounds = array<i64: 16, 13>}, {pipeline_mode = #tpu.pipeline_mode<synchronous>, transform_indices = @transform_1, window_bounds = array<i64: 13, 64>}, {pipeline_mode = #tpu.pipeline_mode<synchronous>, transform_indices = @transform_2, window_bounds = array<i64: 1, 64>}, {pipeline_mode = #tpu.pipeline_mode<synchronous>, transform_indices = @transform_3, window_bounds = array<i64: 5, 64, 192>}, {pipeline_mode = #tpu.pipeline_mode<synchronous>, transform_indices = @transform_4, window_bounds = array<i64: 5, 1, 192>}, {pipeline_mode = #tpu.pipeline_mode<synchronous>, transform_indices = @transform_5, window_bounds = array<i64: 5, 64, 64>}, {pipeline_mode = #tpu.pipeline_mode<synchronous>, transform_indices = @transform_6, window_bounds = array<i64: 5, 1, 64>}, {pipeline_mode = #tpu.pipeline_mode<synchronous>, transform_indices = @transform_7, window_bounds = array<i64: 5, 1, 64>}, {pipeline_mode = #tpu.pipeline_mode<synchronous>, transform_indices = @transform_8, window_bounds = array<i64: 5, 1, 64>}, {pipeline_mode = #tpu.pipeline_mode<synchronous>, transform_indices = @transform_9, window_bounds = array<i64: 5, 64, 128>}, {pipeline_mode = #tpu.pipeline_mode<synchronous>, transform_indices = @transform_10, window_bounds = array<i64: 5, 1, 128>}, {pipeline_mode = #tpu.pipeline_mode<synchronous>, transform_indices = @transform_11, window_bounds = array<i64: 5, 128, 64>}, {pipeline_mode = #tpu.pipeline_mode<synchronous>, transform_indices = @transform_12, window_bounds = array<i64: 5, 1, 64>}, {pipeline_mode = #tpu.pipeline_mode<synchronous>, transform_indices = @transform_13, window_bounds = array<i64: 5, 1, 64>}, {pipeline_mode = #tpu.pipeline_mode<synchronous>, transform_indices = @transform_14, window_bounds = array<i64: 5, 1, 64>}, {pipeline_mode = #tpu.pipeline_mode<synchronous>, transform_indices = @transform_15, window_bounds = array<i64: 1, 64>}, {pipeline_mode = #tpu.pipeline_mode<synchronous>, transform_indices = @transform_16, window_bounds = array<i64: 1, 64>}, {pipeline_mode = #tpu.pipeline_mode<synchronous>, transform_indices = @transform_17, window_bounds = array<i64: 64, 128>}, {pipeline_mode = #tpu.pipeline_mode<synchronous>, transform_indices = @transform_18, window_bounds = array<i64: 1, 128>}, {transform_indices = @transform_19, window_bounds = array<i64: 2, 128>}]} {
    %c0 = arith.constant 0 : index
    %c0_0 = arith.constant 0 : index
    %0 = vector.load %arg1[%c0, %c0_0] : memref<16x13xf32, #tpu.memory_space<vmem>>, vector<16x13xf32>
    %c0_1 = arith.constant 0 : index
    %c0_2 = arith.constant 0 : index
    %1 = vector.load %arg2[%c0_1, %c0_2] : memref<13x64xf32, #tpu.memory_space<vmem>>, vector<13x64xf32>
    %cst = arith.constant dense<0.000000e+00> : vector<16x64xf32>
    %2 = tpu.matmul %0, %1, %cst {dimension_numbers = #tpu.dot_dimension_numbers<[1], [0], [0], [1], [0, 0, 1, 1], [], []>} : vector<16x13xf32>, vector<13x64xf32>, vector<16x64xf32> -> vector<16x64xf32>
    %c0_3 = arith.constant 0 : index
    %c0_4 = arith.constant 0 : index
    %3 = vector.load %arg3[%c0_3, %c0_4] : memref<1x64xf32, #tpu.memory_space<vmem>>, vector<1x64xf32>
    %4 = vector.broadcast %3 : vector<1x64xf32> to vector<16x64xf32>
    %5 = arith.addf %2, %4 : vector<16x64xf32>
    %cst_5 = arith.constant 0.000000e+00 : f32
    %6 = vector.broadcast %cst_5 : f32 to vector<16x64xf32>
    %7 = arith.maximumf %5, %6 : vector<16x64xf32>
    %c0_i32 = arith.constant 0 : i32
    %c5_i32 = arith.constant 5 : i32
    %8 = arith.addi %c0_i32, %c5_i32 : i32
    %c1_i32 = arith.constant 1 : i32
    %9 = scf.for %arg21 = %c0_i32 to %8 step %c1_i32 iter_args(%arg22 = %7) -> (vector<16x64xf32>)  : i32 {
      %55 = arith.index_cast %arg21 : i32 to index
      %c0_27 = arith.constant 0 : index
      %c0_28 = arith.constant 0 : index
      %56 = vector.load %arg4[%55, %c0_27, %c0_28] : memref<5x64x192xf32, #tpu.memory_space<vmem>>, vector<1x64x192xf32>
      %57 = vector.shape_cast %56 : vector<1x64x192xf32> to vector<64x192xf32>
      %cst_29 = arith.constant dense<0.000000e+00> : vector<16x192xf32>
      %58 = tpu.matmul %arg22, %57, %cst_29 {dimension_numbers = #tpu.dot_dimension_numbers<[1], [0], [0], [1], [0, 0, 1, 1], [], []>} : vector<16x64xf32>, vector<64x192xf32>, vector<16x192xf32> -> vector<16x192xf32>
      %59 = arith.index_cast %arg21 : i32 to index
      %c0_30 = arith.constant 0 : index
      %c0_31 = arith.constant 0 : index
      %60 = vector.load %arg5[%59, %c0_30, %c0_31] : memref<5x1x192xf32, #tpu.memory_space<vmem>>, vector<1x1x192xf32>
      %61 = vector.shape_cast %60 : vector<1x1x192xf32> to vector<1x192xf32>
      %62 = vector.broadcast %61 : vector<1x192xf32> to vector<16x192xf32>
      %63 = arith.addf %58, %62 : vector<16x192xf32>
      %64 = vector.extract_strided_slice %63 {offsets = [0, 0], sizes = [16, 64], strides = [1, 1]} : vector<16x192xf32> to vector<16x64xf32>
      %65 = vector.shape_cast %64 : vector<16x64xf32> to vector<2x8x64xf32>
      %cst_32 = arith.constant 0.176776692 : f32
      %66 = vector.broadcast %cst_32 : f32 to vector<2x8x64xf32>
      %67 = arith.mulf %65, %66 : vector<2x8x64xf32>
      %68 = vector.extract_strided_slice %63 {offsets = [0, 64], sizes = [16, 64], strides = [1, 1]} : vector<16x192xf32> to vector<16x64xf32>
      %69 = vector.shape_cast %68 : vector<16x64xf32> to vector<2x8x64xf32>
      %70 = vector.extract_strided_slice %63 {offsets = [0, 128], sizes = [16, 64], strides = [1, 1]} : vector<16x192xf32> to vector<16x64xf32>
      %71 = vector.shape_cast %70 : vector<16x64xf32> to vector<2x8x64xf32>
      %72 = vector.extract_strided_slice %67 {offsets = [0, 0, 0], sizes = [2, 8, 32], strides = [1, 1, 1]} : vector<2x8x64xf32> to vector<2x8x32xf32>
      %73 = vector.extract_strided_slice %69 {offsets = [0, 0, 0], sizes = [2, 8, 32], strides = [1, 1, 1]} : vector<2x8x64xf32> to vector<2x8x32xf32>
      "tpu.trace_start"() <{level = 10 : i32, message = "bqd,bkd->bqk"}> : () -> ()
      %cst_33 = arith.constant dense<0.000000e+00> : vector<2x8x8xf32>
      %74 = tpu.matmul %72, %73, %cst_33 {dimension_numbers = #tpu.dot_dimension_numbers<[2], [2], [1], [1], [0, 0, 0, 1, 1, 1], [0], [0]>} : vector<2x8x32xf32>, vector<2x8x32xf32>, vector<2x8x8xf32> -> vector<2x8x8xf32>
      "tpu.trace_stop"() : () -> ()
      %cst_34 = arith.constant dense<0xFF800000> : vector<2x8xf32>
      %75 = vector.multi_reduction <maximumf>, %74, %cst_34 [2] : vector<2x8x8xf32> to vector<2x8xf32>
      %76 = vector.shape_cast %75 : vector<2x8xf32> to vector<2x8x1xf32>
      %77 = vector.broadcast %76 : vector<2x8x1xf32> to vector<2x8x8xf32>
      %78 = arith.subf %74, %77 : vector<2x8x8xf32>
      %79 = math.exp %78 : vector<2x8x8xf32>
      %cst_35 = arith.constant dense<0.000000e+00> : vector<2x8xf32>
      %80 = vector.multi_reduction <add>, %79, %cst_35 [2] : vector<2x8x8xf32> to vector<2x8xf32>
      %81 = vector.shape_cast %80 : vector<2x8xf32> to vector<2x8x1xf32>
      %82 = tpu.reciprocal %81 {approx = true} : vector<2x8x1xf32> -> vector<2x8x1xf32>
      %83 = vector.broadcast %82 : vector<2x8x1xf32> to vector<2x8x8xf32>
      %84 = arith.mulf %79, %83 : vector<2x8x8xf32>
      %85 = vector.extract_strided_slice %71 {offsets = [0, 0, 0], sizes = [2, 8, 32], strides = [1, 1, 1]} : vector<2x8x64xf32> to vector<2x8x32xf32>
      "tpu.trace_start"() <{level = 10 : i32, message = "bqk,bkd->bqd"}> : () -> ()
      %cst_36 = arith.constant dense<0.000000e+00> : vector<2x8x32xf32>
      %86 = tpu.matmul %84, %85, %cst_36 {dimension_numbers = #tpu.dot_dimension_numbers<[2], [1], [1], [2], [0, 0, 0, 1, 1, 2], [0], [0]>} : vector<2x8x8xf32>, vector<2x8x32xf32>, vector<2x8x32xf32> -> vector<2x8x32xf32>
      "tpu.trace_stop"() : () -> ()
      %87 = vector.extract_strided_slice %67 {offsets = [0, 0, 32], sizes = [2, 8, 32], strides = [1, 1, 1]} : vector<2x8x64xf32> to vector<2x8x32xf32>
      %88 = vector.extract_strided_slice %69 {offsets = [0, 0, 32], sizes = [2, 8, 32], strides = [1, 1, 1]} : vector<2x8x64xf32> to vector<2x8x32xf32>
      "tpu.trace_start"() <{level = 10 : i32, message = "bqd,bkd->bqk"}> : () -> ()
      %cst_37 = arith.constant dense<0.000000e+00> : vector<2x8x8xf32>
      %89 = tpu.matmul %87, %88, %cst_37 {dimension_numbers = #tpu.dot_dimension_numbers<[2], [2], [1], [1], [0, 0, 0, 1, 1, 1], [0], [0]>} : vector<2x8x32xf32>, vector<2x8x32xf32>, vector<2x8x8xf32> -> vector<2x8x8xf32>
      "tpu.trace_stop"() : () -> ()
      %cst_38 = arith.constant dense<0xFF800000> : vector<2x8xf32>
      %90 = vector.multi_reduction <maximumf>, %89, %cst_38 [2] : vector<2x8x8xf32> to vector<2x8xf32>
      %91 = vector.shape_cast %90 : vector<2x8xf32> to vector<2x8x1xf32>
      %92 = vector.broadcast %91 : vector<2x8x1xf32> to vector<2x8x8xf32>
      %93 = arith.subf %89, %92 : vector<2x8x8xf32>
      %94 = math.exp %93 : vector<2x8x8xf32>
      %cst_39 = arith.constant dense<0.000000e+00> : vector<2x8xf32>
      %95 = vector.multi_reduction <add>, %94, %cst_39 [2] : vector<2x8x8xf32> to vector<2x8xf32>
      %96 = vector.shape_cast %95 : vector<2x8xf32> to vector<2x8x1xf32>
      %97 = tpu.reciprocal %96 {approx = true} : vector<2x8x1xf32> -> vector<2x8x1xf32>
      %98 = vector.broadcast %97 : vector<2x8x1xf32> to vector<2x8x8xf32>
      %99 = arith.mulf %94, %98 : vector<2x8x8xf32>
      %100 = vector.extract_strided_slice %71 {offsets = [0, 0, 32], sizes = [2, 8, 32], strides = [1, 1, 1]} : vector<2x8x64xf32> to vector<2x8x32xf32>
      "tpu.trace_start"() <{level = 10 : i32, message = "bqk,bkd->bqd"}> : () -> ()
      %cst_40 = arith.constant dense<0.000000e+00> : vector<2x8x32xf32>
      %101 = tpu.matmul %99, %100, %cst_40 {dimension_numbers = #tpu.dot_dimension_numbers<[2], [1], [1], [2], [0, 0, 0, 1, 1, 2], [0], [0]>} : vector<2x8x8xf32>, vector<2x8x32xf32>, vector<2x8x32xf32> -> vector<2x8x32xf32>
      "tpu.trace_stop"() : () -> ()
      %102 = tpu.concatenate %86, %101 in 2 : vector<2x8x32xf32>, vector<2x8x32xf32> -> vector<2x8x64xf32>
      %103 = vector.shape_cast %102 : vector<2x8x64xf32> to vector<16x64xf32>
      %104 = arith.index_cast %arg21 : i32 to index
      %c0_41 = arith.constant 0 : index
      %c0_42 = arith.constant 0 : index
      %105 = vector.load %arg6[%104, %c0_41, %c0_42] : memref<5x64x64xf32, #tpu.memory_space<vmem>>, vector<1x64x64xf32>
      %106 = vector.shape_cast %105 : vector<1x64x64xf32> to vector<64x64xf32>
      %cst_43 = arith.constant dense<0.000000e+00> : vector<16x64xf32>
      %107 = tpu.matmul %103, %106, %cst_43 {dimension_numbers = #tpu.dot_dimension_numbers<[1], [0], [0], [1], [0, 0, 1, 1], [], []>} : vector<16x64xf32>, vector<64x64xf32>, vector<16x64xf32> -> vector<16x64xf32>
      %108 = arith.index_cast %arg21 : i32 to index
      %c0_44 = arith.constant 0 : index
      %c0_45 = arith.constant 0 : index
      %109 = vector.load %arg7[%108, %c0_44, %c0_45] : memref<5x1x64xf32, #tpu.memory_space<vmem>>, vector<1x1x64xf32>
      %110 = vector.shape_cast %109 : vector<1x1x64xf32> to vector<1x64xf32>
      %111 = vector.broadcast %110 : vector<1x64xf32> to vector<16x64xf32>
      %112 = arith.addf %107, %111 : vector<16x64xf32>
      %113 = arith.addf %arg22, %112 : vector<16x64xf32>
      %114 = arith.index_cast %arg21 : i32 to index
      %c0_46 = arith.constant 0 : index
      %c0_47 = arith.constant 0 : index
      %115 = vector.load %arg8[%114, %c0_46, %c0_47] : memref<5x1x64xf32, #tpu.memory_space<vmem>>, vector<1x1x64xf32>
      %116 = vector.shape_cast %115 : vector<1x1x64xf32> to vector<1x64xf32>
      %117 = arith.index_cast %arg21 : i32 to index
      %c0_48 = arith.constant 0 : index
      %c0_49 = arith.constant 0 : index
      %118 = vector.load %arg9[%117, %c0_48, %c0_49] : memref<5x1x64xf32, #tpu.memory_space<vmem>>, vector<1x1x64xf32>
      %119 = vector.shape_cast %118 : vector<1x1x64xf32> to vector<1x64xf32>
      %cst_50 = arith.constant dense<0.000000e+00> : vector<16xf32>
      %120 = vector.multi_reduction <add>, %113, %cst_50 [1] : vector<16x64xf32> to vector<16xf32>
      %121 = vector.shape_cast %120 : vector<16xf32> to vector<16x1xf32>
      %cst_51 = arith.constant 6.400000e+01 : f32
      %122 = vector.broadcast %cst_51 : f32 to vector<16x1xf32>
      %123 = arith.divf %121, %122 : vector<16x1xf32>
      %124 = vector.broadcast %123 : vector<16x1xf32> to vector<16x64xf32>
      %125 = arith.subf %113, %124 : vector<16x64xf32>
      %126 = arith.mulf %125, %125 : vector<16x64xf32>
      %cst_52 = arith.constant dense<0.000000e+00> : vector<16xf32>
      %127 = vector.multi_reduction <add>, %126, %cst_52 [1] : vector<16x64xf32> to vector<16xf32>
      %128 = vector.shape_cast %127 : vector<16xf32> to vector<16x1xf32>
      %cst_53 = arith.constant 6.400000e+01 : f32
      %129 = vector.broadcast %cst_53 : f32 to vector<16x1xf32>
      %130 = arith.divf %128, %129 : vector<16x1xf32>
      %131 = vector.broadcast %123 : vector<16x1xf32> to vector<16x64xf32>
      %132 = arith.subf %113, %131 : vector<16x64xf32>
      %cst_54 = arith.constant 9.99999974E-6 : f32
      %133 = vector.broadcast %cst_54 : f32 to vector<16x1xf32>
      %134 = arith.addf %130, %133 : vector<16x1xf32>
      %135 = math.rsqrt %134 : vector<16x1xf32>
      %136 = vector.broadcast %135 : vector<16x1xf32> to vector<16x64xf32>
      %137 = arith.mulf %132, %136 : vector<16x64xf32>
      %138 = vector.broadcast %116 : vector<1x64xf32> to vector<16x64xf32>
      %139 = arith.mulf %137, %138 : vector<16x64xf32>
      %140 = vector.broadcast %119 : vector<1x64xf32> to vector<16x64xf32>
      %141 = arith.addf %139, %140 : vector<16x64xf32>
      %142 = arith.index_cast %arg21 : i32 to index
      %c0_55 = arith.constant 0 : index
      %c0_56 = arith.constant 0 : index
      %143 = vector.load %arg10[%142, %c0_55, %c0_56] : memref<5x64x128xf32, #tpu.memory_space<vmem>>, vector<1x64x128xf32>
      %144 = vector.shape_cast %143 : vector<1x64x128xf32> to vector<64x128xf32>
      %cst_57 = arith.constant dense<0.000000e+00> : vector<16x128xf32>
      %145 = tpu.matmul %141, %144, %cst_57 {dimension_numbers = #tpu.dot_dimension_numbers<[1], [0], [0], [1], [0, 0, 1, 1], [], []>} : vector<16x64xf32>, vector<64x128xf32>, vector<16x128xf32> -> vector<16x128xf32>
      %146 = arith.index_cast %arg21 : i32 to index
      %c0_58 = arith.constant 0 : index
      %c0_59 = arith.constant 0 : index
      %147 = vector.load %arg11[%146, %c0_58, %c0_59] : memref<5x1x128xf32, #tpu.memory_space<vmem>>, vector<1x1x128xf32>
      %148 = vector.shape_cast %147 : vector<1x1x128xf32> to vector<1x128xf32>
      %149 = vector.broadcast %148 : vector<1x128xf32> to vector<16x128xf32>
      %150 = arith.addf %145, %149 : vector<16x128xf32>
      %cst_60 = arith.constant 0.000000e+00 : f32
      %151 = vector.broadcast %cst_60 : f32 to vector<16x128xf32>
      %152 = arith.maximumf %150, %151 : vector<16x128xf32>
      %153 = arith.index_cast %arg21 : i32 to index
      %c0_61 = arith.constant 0 : index
      %c0_62 = arith.constant 0 : index
      %154 = vector.load %arg12[%153, %c0_61, %c0_62] : memref<5x128x64xf32, #tpu.memory_space<vmem>>, vector<1x128x64xf32>
      %155 = vector.shape_cast %154 : vector<1x128x64xf32> to vector<128x64xf32>
      %cst_63 = arith.constant dense<0.000000e+00> : vector<16x64xf32>
      %156 = tpu.matmul %152, %155, %cst_63 {dimension_numbers = #tpu.dot_dimension_numbers<[1], [0], [0], [1], [0, 0, 1, 1], [], []>} : vector<16x128xf32>, vector<128x64xf32>, vector<16x64xf32> -> vector<16x64xf32>
      %157 = arith.index_cast %arg21 : i32 to index
      %c0_64 = arith.constant 0 : index
      %c0_65 = arith.constant 0 : index
      %158 = vector.load %arg13[%157, %c0_64, %c0_65] : memref<5x1x64xf32, #tpu.memory_space<vmem>>, vector<1x1x64xf32>
      %159 = vector.shape_cast %158 : vector<1x1x64xf32> to vector<1x64xf32>
      %160 = vector.broadcast %159 : vector<1x64xf32> to vector<16x64xf32>
      %161 = arith.addf %156, %160 : vector<16x64xf32>
      %162 = arith.addf %141, %161 : vector<16x64xf32>
      %163 = arith.index_cast %arg21 : i32 to index
      %c0_66 = arith.constant 0 : index
      %c0_67 = arith.constant 0 : index
      %164 = vector.load %arg14[%163, %c0_66, %c0_67] : memref<5x1x64xf32, #tpu.memory_space<vmem>>, vector<1x1x64xf32>
      %165 = vector.shape_cast %164 : vector<1x1x64xf32> to vector<1x64xf32>
      %166 = arith.index_cast %arg21 : i32 to index
      %c0_68 = arith.constant 0 : index
      %c0_69 = arith.constant 0 : index
      %167 = vector.load %arg15[%166, %c0_68, %c0_69] : memref<5x1x64xf32, #tpu.memory_space<vmem>>, vector<1x1x64xf32>
      %168 = vector.shape_cast %167 : vector<1x1x64xf32> to vector<1x64xf32>
      %cst_70 = arith.constant dense<0.000000e+00> : vector<16xf32>
      %169 = vector.multi_reduction <add>, %162, %cst_70 [1] : vector<16x64xf32> to vector<16xf32>
      %170 = vector.shape_cast %169 : vector<16xf32> to vector<16x1xf32>
      %cst_71 = arith.constant 6.400000e+01 : f32
      %171 = vector.broadcast %cst_71 : f32 to vector<16x1xf32>
      %172 = arith.divf %170, %171 : vector<16x1xf32>
      %173 = vector.broadcast %172 : vector<16x1xf32> to vector<16x64xf32>
      %174 = arith.subf %162, %173 : vector<16x64xf32>
      %175 = arith.mulf %174, %174 : vector<16x64xf32>
      %cst_72 = arith.constant dense<0.000000e+00> : vector<16xf32>
      %176 = vector.multi_reduction <add>, %175, %cst_72 [1] : vector<16x64xf32> to vector<16xf32>
      %177 = vector.shape_cast %176 : vector<16xf32> to vector<16x1xf32>
      %cst_73 = arith.constant 6.400000e+01 : f32
      %178 = vector.broadcast %cst_73 : f32 to vector<16x1xf32>
      %179 = arith.divf %177, %178 : vector<16x1xf32>
      %180 = vector.broadcast %172 : vector<16x1xf32> to vector<16x64xf32>
      %181 = arith.subf %162, %180 : vector<16x64xf32>
      %cst_74 = arith.constant 9.99999974E-6 : f32
      %182 = vector.broadcast %cst_74 : f32 to vector<16x1xf32>
      %183 = arith.addf %179, %182 : vector<16x1xf32>
      %184 = math.rsqrt %183 : vector<16x1xf32>
      %185 = vector.broadcast %184 : vector<16x1xf32> to vector<16x64xf32>
      %186 = arith.mulf %181, %185 : vector<16x64xf32>
      %187 = vector.broadcast %165 : vector<1x64xf32> to vector<16x64xf32>
      %188 = arith.mulf %186, %187 : vector<16x64xf32>
      %189 = vector.broadcast %168 : vector<1x64xf32> to vector<16x64xf32>
      %190 = arith.addf %188, %189 : vector<16x64xf32>
      scf.yield %190 : vector<16x64xf32>
    }
    %c5_i32_6 = arith.constant 5 : i32
    %c0_7 = arith.constant 0 : index
    %c0_8 = arith.constant 0 : index
    %10 = vector.load %arg16[%c0_7, %c0_8] : memref<1x64xf32, #tpu.memory_space<vmem>>, vector<1x64xf32>
    %c0_9 = arith.constant 0 : index
    %c0_10 = arith.constant 0 : index
    %11 = vector.load %arg17[%c0_9, %c0_10] : memref<1x64xf32, #tpu.memory_space<vmem>>, vector<1x64xf32>
    %cst_11 = arith.constant dense<0.000000e+00> : vector<16xf32>
    %12 = vector.multi_reduction <add>, %9, %cst_11 [1] : vector<16x64xf32> to vector<16xf32>
    %13 = vector.shape_cast %12 : vector<16xf32> to vector<16x1xf32>
    %cst_12 = arith.constant 6.400000e+01 : f32
    %14 = vector.broadcast %cst_12 : f32 to vector<16x1xf32>
    %15 = arith.divf %13, %14 : vector<16x1xf32>
    %16 = vector.broadcast %15 : vector<16x1xf32> to vector<16x64xf32>
    %17 = arith.subf %9, %16 : vector<16x64xf32>
    %18 = arith.mulf %17, %17 : vector<16x64xf32>
    %cst_13 = arith.constant dense<0.000000e+00> : vector<16xf32>
    %19 = vector.multi_reduction <add>, %18, %cst_13 [1] : vector<16x64xf32> to vector<16xf32>
    %20 = vector.shape_cast %19 : vector<16xf32> to vector<16x1xf32>
    %cst_14 = arith.constant 6.400000e+01 : f32
    %21 = vector.broadcast %cst_14 : f32 to vector<16x1xf32>
    %22 = arith.divf %20, %21 : vector<16x1xf32>
    %23 = vector.broadcast %15 : vector<16x1xf32> to vector<16x64xf32>
    %24 = arith.subf %9, %23 : vector<16x64xf32>
    %cst_15 = arith.constant 9.99999974E-6 : f32
    %25 = vector.broadcast %cst_15 : f32 to vector<16x1xf32>
    %26 = arith.addf %22, %25 : vector<16x1xf32>
    %27 = math.rsqrt %26 : vector<16x1xf32>
    %28 = vector.broadcast %27 : vector<16x1xf32> to vector<16x64xf32>
    %29 = arith.mulf %24, %28 : vector<16x64xf32>
    %30 = vector.broadcast %10 : vector<1x64xf32> to vector<16x64xf32>
    %31 = arith.mulf %29, %30 : vector<16x64xf32>
    %32 = vector.broadcast %11 : vector<1x64xf32> to vector<16x64xf32>
    %33 = arith.addf %31, %32 : vector<16x64xf32>
    %34 = vector.shape_cast %33 : vector<16x64xf32> to vector<2x8x64xf32>
    %cst_16 = arith.constant dense<0xFF800000> : vector<2x64xf32>
    %35 = vector.multi_reduction <maximumf>, %34, %cst_16 [1] : vector<2x8x64xf32> to vector<2x64xf32>
    %cst_17 = arith.constant 0.000000e+00 : f32
    %36 = vector.broadcast %cst_17 : f32 to vector<2x64xf32>
    %37 = arith.maximumf %35, %36 : vector<2x64xf32>
    %c0_18 = arith.constant 0 : index
    %c0_19 = arith.constant 0 : index
    %38 = vector.load %arg18[%c0_18, %c0_19] : memref<64x128xf32, #tpu.memory_space<vmem>>, vector<64x128xf32>
    %cst_20 = arith.constant dense<0.000000e+00> : vector<2x128xf32>
    %39 = tpu.matmul %37, %38, %cst_20 {dimension_numbers = #tpu.dot_dimension_numbers<[1], [0], [0], [1], [0, 0, 1, 1], [], []>} : vector<2x64xf32>, vector<64x128xf32>, vector<2x128xf32> -> vector<2x128xf32>
    %c0_21 = arith.constant 0 : index
    %c0_22 = arith.constant 0 : index
    %40 = vector.load %arg19[%c0_21, %c0_22] : memref<1x128xf32, #tpu.memory_space<vmem>>, vector<1x128xf32>
    %41 = vector.broadcast %40 : vector<1x128xf32> to vector<2x128xf32>
    %42 = arith.addf %39, %41 : vector<2x128xf32>
    %cst_23 = arith.constant dense<0xFF800000> : vector<2xf32>
    %43 = vector.multi_reduction <maximumf>, %42, %cst_23 [1] : vector<2x128xf32> to vector<2xf32>
    %44 = vector.shape_cast %43 : vector<2xf32> to vector<2x1xf32>
    %45 = vector.broadcast %44 : vector<2x1xf32> to vector<2x128xf32>
    %46 = arith.subf %42, %45 : vector<2x128xf32>
    %47 = math.exp %46 : vector<2x128xf32>
    %cst_24 = arith.constant dense<0.000000e+00> : vector<2xf32>
    %48 = vector.multi_reduction <add>, %47, %cst_24 [1] : vector<2x128xf32> to vector<2xf32>
    %49 = vector.shape_cast %48 : vector<2xf32> to vector<2x1xf32>
    %50 = math.log %49 : vector<2x1xf32>
    %51 = arith.addf %44, %50 : vector<2x1xf32>
    %52 = vector.broadcast %51 : vector<2x1xf32> to vector<2x128xf32>
    %53 = arith.subf %42, %52 : vector<2x128xf32>
    %c0_25 = arith.constant 0 : index
    %c0_26 = arith.constant 0 : index
    %54 = vector.load %arg20[%c0_25, %c0_26] : memref<2x128xf32, #tpu.memory_space<vmem>>, vector<2x128xf32>
    tpu.vector_store %arg20[%c0_25, %c0_26], %53 {strides = array<i32>} : memref<2x128xf32, #tpu.memory_space<vmem>>, vector<2x128xf32>,
    return
  }
  func.func @transform_0(%arg0: i32) -> (i32, i32) {
    %c0_i32 = arith.constant 0 : i32
    %c0_i32_0 = arith.constant 0 : i32
    return %arg0, %c0_i32 : i32, i32
  }
  func.func @transform_1(%arg0: i32) -> (i32, i32) {
    %c0_i32 = arith.constant 0 : i32
    %c0_i32_0 = arith.constant 0 : i32
    %c0_i32_1 = arith.constant 0 : i32
    return %c0_i32, %c0_i32_0 : i32, i32
  }
  func.func @transform_2(%arg0: i32) -> (i32, i32) {
    %c0_i32 = arith.constant 0 : i32
    %c0_i32_0 = arith.constant 0 : i32
    %c0_i32_1 = arith.constant 0 : i32
    return %c0_i32, %c0_i32_0 : i32, i32
  }
  func.func @transform_3(%arg0: i32) -> (i32, i32, i32) {
    %c0_i32 = arith.constant 0 : i32
    %c0_i32_0 = arith.constant 0 : i32
    %c0_i32_1 = arith.constant 0 : i32
    %c0_i32_2 = arith.constant 0 : i32
    return %c0_i32, %c0_i32_0, %c0_i32_1 : i32, i32, i32
  }
  func.func @transform_4(%arg0: i32) -> (i32, i32, i32) {
    %c0_i32 = arith.constant 0 : i32
    %c0_i32_0 = arith.constant 0 : i32
    %c0_i32_1 = arith.constant 0 : i32
    %c0_i32_2 = arith.constant 0 : i32
    return %c0_i32, %c0_i32_0, %c0_i32_1 : i32, i32, i32
  }
  func.func @transform_5(%arg0: i32) -> (i32, i32, i32) {
    %c0_i32 = arith.constant 0 : i32
    %c0_i32_0 = arith.constant 0 : i32
    %c0_i32_1 = arith.constant 0 : i32
    %c0_i32_2 = arith.constant 0 : i32
    return %c0_i32, %c0_i32_0, %c0_i32_1 : i32, i32, i32
  }
  func.func @transform_6(%arg0: i32) -> (i32, i32, i32) {
    %c0_i32 = arith.constant 0 : i32
    %c0_i32_0 = arith.constant 0 : i32
    %c0_i32_1 = arith.constant 0 : i32
    %c0_i32_2 = arith.constant 0 : i32
    return %c0_i32, %c0_i32_0, %c0_i32_1 : i32, i32, i32
  }
  func.func @transform_7(%arg0: i32) -> (i32, i32, i32) {
    %c0_i32 = arith.constant 0 : i32
    %c0_i32_0 = arith.constant 0 : i32
    %c0_i32_1 = arith.constant 0 : i32
    %c0_i32_2 = arith.constant 0 : i32
    return %c0_i32, %c0_i32_0, %c0_i32_1 : i32, i32, i32
  }
  func.func @transform_8(%arg0: i32) -> (i32, i32, i32) {
    %c0_i32 = arith.constant 0 : i32
    %c0_i32_0 = arith.constant 0 : i32
    %c0_i32_1 = arith.constant 0 : i32
    %c0_i32_2 = arith.constant 0 : i32
    return %c0_i32, %c0_i32_0, %c0_i32_1 : i32, i32, i32
  }
  func.func @transform_9(%arg0: i32) -> (i32, i32, i32) {
    %c0_i32 = arith.constant 0 : i32
    %c0_i32_0 = arith.constant 0 : i32
    %c0_i32_1 = arith.constant 0 : i32
    %c0_i32_2 = arith.constant 0 : i32
    return %c0_i32, %c0_i32_0, %c0_i32_1 : i32, i32, i32
  }
  func.func @transform_10(%arg0: i32) -> (i32, i32, i32) {
    %c0_i32 = arith.constant 0 : i32
    %c0_i32_0 = arith.constant 0 : i32
    %c0_i32_1 = arith.constant 0 : i32
    %c0_i32_2 = arith.constant 0 : i32
    return %c0_i32, %c0_i32_0, %c0_i32_1 : i32, i32, i32
  }
  func.func @transform_11(%arg0: i32) -> (i32, i32, i32) {
    %c0_i32 = arith.constant 0 : i32
    %c0_i32_0 = arith.constant 0 : i32
    %c0_i32_1 = arith.constant 0 : i32
    %c0_i32_2 = arith.constant 0 : i32
    return %c0_i32, %c0_i32_0, %c0_i32_1 : i32, i32, i32
  }
  func.func @transform_12(%arg0: i32) -> (i32, i32, i32) {
    %c0_i32 = arith.constant 0 : i32
    %c0_i32_0 = arith.constant 0 : i32
    %c0_i32_1 = arith.constant 0 : i32
    %c0_i32_2 = arith.constant 0 : i32
    return %c0_i32, %c0_i32_0, %c0_i32_1 : i32, i32, i32
  }
  func.func @transform_13(%arg0: i32) -> (i32, i32, i32) {
    %c0_i32 = arith.constant 0 : i32
    %c0_i32_0 = arith.constant 0 : i32
    %c0_i32_1 = arith.constant 0 : i32
    %c0_i32_2 = arith.constant 0 : i32
    return %c0_i32, %c0_i32_0, %c0_i32_1 : i32, i32, i32
  }
  func.func @transform_14(%arg0: i32) -> (i32, i32, i32) {
    %c0_i32 = arith.constant 0 : i32
    %c0_i32_0 = arith.constant 0 : i32
    %c0_i32_1 = arith.constant 0 : i32
    %c0_i32_2 = arith.constant 0 : i32
    return %c0_i32, %c0_i32_0, %c0_i32_1 : i32, i32, i32
  }
  func.func @transform_15(%arg0: i32) -> (i32, i32) {
    %c0_i32 = arith.constant 0 : i32
    %c0_i32_0 = arith.constant 0 : i32
    %c0_i32_1 = arith.constant 0 : i32
    return %c0_i32, %c0_i32_0 : i32, i32
  }
  func.func @transform_16(%arg0: i32) -> (i32, i32) {
    %c0_i32 = arith.constant 0 : i32
    %c0_i32_0 = arith.constant 0 : i32
    %c0_i32_1 = arith.constant 0 : i32
    return %c0_i32, %c0_i32_0 : i32, i32
  }
  func.func @transform_17(%arg0: i32) -> (i32, i32) {
    %c0_i32 = arith.constant 0 : i32
    %c0_i32_0 = arith.constant 0 : i32
    %c0_i32_1 = arith.constant 0 : i32
    return %c0_i32, %c0_i32_0 : i32, i32
  }
  func.func @transform_18(%arg0: i32) -> (i32, i32) {
    %c0_i32 = arith.constant 0 : i32
    %c0_i32_0 = arith.constant 0 : i32
    %c0_i32_1 = arith.constant 0 : i32
    return %c0_i32, %c0_i32_0 : i32, i32
  }
  func.func @transform_19(%arg0: i32) -> (i32, i32) {
    %c0_i32 = arith.constant 0 : i32
    %c0_i32_0 = arith.constant 0 : i32
    return %arg0, %c0_i32 : i32, i32
  }
}

</mosaic_0001>

<bundles_post_ra>
// kernel: tpu_custom_call.1
= control target key start
LH: loop header
LB: loop body
LE: loop exit
PB: predicated region body
PF: predicated region fallthrough
CT: control target
= control target key end

     0   :  { %s2640_s0 = inlined_call_operand.hbm [shape: f32[16,13], index: 0, kind: input, shape index: {}]   ;;  %s2641_s1 = inlined_call_operand.hbm [shape: f32[13,64], index: 1, kind: input, shape index: {}]   ;;  %s2642_s2 = inlined_call_operand.vmem [shape: f32[1,64], index: 2, kind: input, shape index: {}]   ;;  %s2643_s3 = inlined_call_operand.vmem [shape: f32[5,64,192], index: 3, kind: input, shape index: {}]   ;;  %s2644_s4 = inlined_call_operand.vmem [shape: f32[5,1,192], index: 4, kind: input, shape index: {}]   ;;  %s2645_s5 = inlined_call_operand.vmem [shape: f32[5,64,64], index: 5, kind: input, shape index: {}]   ;;  %s2646_s6 = inlined_call_operand.vmem [shape: f32[5,1,64], index: 6, kind: input, shape index: {}]   ;;  %s2647_s7 = inlined_call_operand.vmem [shape: f32[5,1,64], index: 7, kind: input, shape index: {}]   ;;  %s2648_s8 = inlined_call_operand.hbm [shape: f32[5,1,64], index: 8, kind: input, shape index: {}]   ;;  %s2649_s9 = inlined_call_operand.hbm [shape: f32[5,64,128], index: 9, kind: input, shape index: {}]   ;;  %s2650_s10 = inlined_call_operand.vmem [shape: f32[5,1,128], index: 10, kind: input, shape index: {}]   ;;  %s2651_s11 = inlined_call_operand.vmem [shape: f32[5,128,64], index: 11, kind: input, shape index: {}]   ;;  %s2652_s12 = inlined_call_operand.vmem [shape: f32[5,1,64], index: 12, kind: input, shape index: {}]   ;;  %s2653_s13 = inlined_call_operand.vmem [shape: f32[5,1,64], index: 13, kind: input, shape index: {}]   ;;  %s2654_s14 = inlined_call_operand.vmem [shape: f32[5,1,64], index: 14, kind: input, shape index: {}]   ;;  %s2655_s15 = inlined_call_operand.vmem [shape: f32[1,64], index: 15, kind: input, shape index: {}]   ;;  %s2656_s16 = inlined_call_operand.vmem [shape: f32[1,64], index: 16, kind: input, shape index: {}]   ;;  %s2657_s17 = inlined_call_operand.hbm [shape: f32[64,128], index: 17, kind: input, shape index: {}]   ;;  %s2658_s18 = inlined_call_operand.vmem [shape: f32[1,128], index: 18, kind: input, shape index: {}]   ;;  %s2659_s19 = inlined_call_operand.hbm [shape: f32[2,128], index: 19, kind: output, shape index: {}]  }
   0x1   :  { %2663 = sst [smem:[#allocation16_spill]] %s2640_s0 }
   0x2   :  { %2664 = sst [smem:[#allocation17_spill]] %s2641_s1 }
   0x3   :  { %2665 = sst [smem:[#allocation18_spill]] %s2642_s2 }
   0x4   :  { %2666 = sst [smem:[#allocation19_spill]] %s2643_s3 }
   0x5   :  { %2667 = sst [smem:[#allocation20_spill]] %s2658_s18 }
   0x6   :  { %2668 = sst [smem:[#allocation21_spill]] %s2659_s19 }
   0x7   :  { %24 = vsyncpa [#allocation3], 0 }
   0x8   :  { %25 = vsyncpa [#allocation6], 0 }
   0x9   :  { %26 = vsyncpa [#allocation9], 0 }
   0xa   :  { %27 = vsyncpa [#allocation4], 0  ;;  %s2217_s0 = smov [#allocation5]   ;;  %s2218_s20 = smov [#allocation8]  }
   0xb   :  { %s45_s30 = sshll.u32 %s2217_s0, 4  ;;  %s81_s21 = sshll.u32 %s2218_s20, 4  ;;  %s46_s30 = int_to_ptr.vmem [resolvable:$true] %s45_s30  ;;  %s2336_s21 = int_to_ptr.vmem [resolvable:$true] %s81_s21 }
   0xc   :  { %s2669_s2 = sld [smem:[#allocation17_spill]] }
  0x12   :  { %s2053_s23 = scalar_lea.hbm %s2669_s2, 256 }
  0x13   :  { %p2054_p0 = scmp.ne.s32.totalorder %s2669_s2, %s2053_s23  ;;  %p2057_p1 = scmp.lt.u32.totalorder %s2053_s23, %s2669_s2 }
  0x15   :  { %p2059_p2 = pnand %p2057_p1, %p2054_p0 }
  0x17   :  { %2062 = shalt.err (!%p2059_p2)
}
  0x18   :  { %s2063_s27 = scalar_lea.vmem %s46_s30, 256  ;;  %p2068_p4 = scmp.lt.s32.totalorder %s46_s30, %s46_s30 }
  0x19   :  { %p2064_p3 = scmp.ne.s32.totalorder %s46_s30, %s2063_s27  ;;  %p2069_p5 = scmp.lt.s32.totalorder %s2063_s27, %s2063_s27 }
  0x1b   :  { %p2070_p6 = por %p2069_p5, %p2068_p4 }
  0x1d   :  { %p2071_p7 = pnand %p2070_p6, %p2064_p3 }
  0x1f   :  { %2074 = shalt.err (!%p2071_p7)
}
  0x20   :  { %s2219_s28 = smov 128   ;;  %s2220_s29 = smov 8  }
  0x21   :  { %51 = dma.hbm_to_vmem [thread:$0]  %s2669_s2, 256, %s46_s30, [#allocation6], %s2219_s28, %s2219_s28, %s2220_s29  }
  0x22   :  { %s2075_s23 = scalar_lea.hbm %s2649_s9, 5120 }
  0x23   :  { %p2076_p8 = scmp.ne.s32.totalorder %s2649_s9, %s2075_s23  ;;  %p2079_p9 = scmp.lt.u32.totalorder %s2075_s23, %s2649_s9 }
  0x25   :  { %p2081_p10 = pnand %p2079_p9, %p2076_p8 }
  0x27   :  { %2084 = shalt.err (!%p2081_p10)
}
  0x28   :  { %s2085_s27 = scalar_lea.vmem %s2336_s21, 5120  ;;  %p2090_p12 = scmp.lt.s32.totalorder %s2336_s21, %s2336_s21 }
  0x29   :  { %p2086_p11 = scmp.ne.s32.totalorder %s2336_s21, %s2085_s27  ;;  %p2091_p13 = scmp.lt.s32.totalorder %s2085_s27, %s2085_s27 }
  0x2b   :  { %p2092_p0 = por %p2091_p13, %p2090_p12 }
  0x2d   :  { %p2093_p1 = pnand %p2092_p0, %p2086_p11 }
  0x2f   :  { %2096 = shalt.err (!%p2093_p1)
}
  0x30   :  { %87 = dma.hbm_to_vmem [thread:$0]  %s2649_s9, 5120, %s2336_s21, [#allocation9], %s2219_s28, %s2219_s28, %s2220_s29  }
  0x31   :  { %s2221_s0 = smov [#allocation2]   ;;  %s2222_s1 = smov [#allocation7]  }
  0x32   :  { %s33_s20 = sshll.u32 %s2221_s0, 4  ;;  %s69_s22 = sshll.u32 %s2222_s1, 4  ;;  %s34_s20 = int_to_ptr.vmem [resolvable:$true] %s33_s20  ;;  %s2373_s22 = int_to_ptr.vmem [resolvable:$true] %s69_s22 }
  0x33   :  { %s2670_s25 = sld [smem:[#allocation16_spill]] }
  0x39   :  { %s2097_s3 = scalar_lea.hbm %s2670_s25, 256 }
  0x3a   :  { %p2098_p2 = scmp.ne.s32.totalorder %s2670_s25, %s2097_s3  ;;  %p2101_p3 = scmp.lt.u32.totalorder %s2097_s3, %s2670_s25 }
  0x3c   :  { %p2103_p4 = pnand %p2101_p3, %p2098_p2 }
  0x3e   :  { %2106 = shalt.err (!%p2103_p4)
}
  0x3f   :  { %s2107_s9 = scalar_lea.vmem %s34_s20, 256  ;;  %p2112_p6 = scmp.lt.s32.totalorder %s34_s20, %s34_s20 }
  0x40   :  { %p2108_p5 = scmp.ne.s32.totalorder %s34_s20, %s2107_s9  ;;  %p2113_p7 = scmp.lt.s32.totalorder %s2107_s9, %s2107_s9 }
  0x42   :  { %p2114_p8 = por %p2113_p7, %p2112_p6 }
  0x44   :  { %p2115_p9 = pnand %p2114_p8, %p2108_p5 }
  0x46   :  { %2118 = shalt.err (!%p2115_p9)
}
  0x47   :  { %39 = dma.hbm_to_vmem [thread:$0]  %s2670_s25, 256, %s34_s20, [#allocation3], %s2219_s28, %s2219_s28, %s2220_s29  }
  0x48   :  { %s2119_s18 = scalar_lea.hbm %s2648_s8, 80 }
  0x49   :  { %p2120_p10 = scmp.ne.s32.totalorder %s2648_s8, %s2119_s18  ;;  %p2123_p11 = scmp.lt.u32.totalorder %s2119_s18, %s2648_s8 }
  0x4b   :  { %p2125_p12 = pnand %p2123_p11, %p2120_p10 }
  0x4d   :  { %2128 = shalt.err (!%p2125_p12)
}
  0x4e   :  { %s2129_s3 = scalar_lea.vmem %s2373_s22, 80  ;;  %s2133_s20 = scalar_lea.vmem %s2373_s22, 96 }
  0x4f   :  { %p2130_p13 = scmp.ne.s32.totalorder %s2373_s22, %s2129_s3  ;;  %p2134_p0 = scmp.lt.s32.totalorder %s2373_s22, %s2373_s22 }
  0x50   :  { %p2135_p1 = scmp.lt.s32.totalorder %s2133_s20, %s2129_s3 }
  0x52   :  { %p2136_p2 = por %p2135_p1, %p2134_p0 }
  0x54   :  { %p2137_p3 = pnand %p2136_p2, %p2130_p13 }
  0x56   :  { %2140 = shalt.err (!%p2137_p3)
}
  0x57   :  { %s2223_s25 = smov 16   ;;  %s2224_s26 = smov 1  }
  0x58   :  { %75 = dma.hbm_to_vmem [thread:$0]  %s2648_s8, 80, %s2373_s22, [#allocation6], %s2223_s25, %s2223_s25, %s2224_s26  }
  0x59   :  { %s2225_s21 = smov [#allocation10]   ;;  %s2141_s18 = scalar_lea.hbm %s2657_s17, 1024 }
  0x5a   :  { %s107_s30 = sshll.u32 %s2225_s21, 4  ;;  %p2142_p4 = scmp.ne.s32.totalorder %s2657_s17, %s2141_s18  ;;  %s108_s30 = int_to_ptr.vmem [resolvable:$true] %s107_s30 }
  0x5b   :  { %p2145_p5 = scmp.lt.u32.totalorder %s2141_s18, %s2657_s17 }
  0x5d   :  { %p2147_p6 = pnand %p2145_p5, %p2142_p4 }
  0x5f   :  { %2150 = shalt.err (!%p2147_p6)
}
  0x60   :  { %s2151_s3 = scalar_lea.vmem %s108_s30, 1024  ;;  %p2156_p8 = scmp.lt.s32.totalorder %s108_s30, %s108_s30 }
  0x61   :  { %p2152_p7 = scmp.ne.s32.totalorder %s108_s30, %s2151_s3  ;;  %p2157_p9 = scmp.lt.s32.totalorder %s2151_s3, %s2151_s3 }
  0x63   :  { %p2158_p10 = por %p2157_p9, %p2156_p8 }
  0x65   :  { %p2159_p11 = pnand %p2158_p10, %p2152_p7 }
  0x67   :  { %2162 = shalt.err (!%p2159_p11)
}
  0x68   :  { %113 = dma.hbm_to_vmem [thread:$0]  %s2657_s17, 1024, %s108_s30, [#allocation9], %s2219_s28, %s2219_s28, %s2220_s29  }
  0x69   :  { %2197 = dma.done.wait [#allocation3], 256  }
  0x6a   :  { %2198 = vsyncadd [#allocation3], 4294967040 }
  0x6b   :  { %2199 = dma.done.wait [#allocation6], 336  }
  0x6c   :  { %2200 = vsyncadd [#allocation6], 4294966960 }
  0x6d   :  { %2201 = dma.done.wait [#allocation9], 6144  }
  0x6e   :  { %2202 = vsyncadd [#allocation9], 4294961152  ;;  %vm149_vm0 = vcmask 1044480   ;;  %vm142_vm1 = vcmask 105472   ;;  %vm2226_vm2 = vmmov 1   ;;  %v133_v0 = vld [vmem:[#allocation5] sm:$0xff] }
  0x6f   :  { %vm1881_vm3 = vmpackc.low %vm149_vm0, %vm2226_vm2  ;;  %v134_v1 = vld [vmem:[#allocation5 + $0x8] sm:$0x1f]  ;;  %v131_v2 = vld [vmem:[#allocation2] sm:$0xff]  ;;  %s2671_s29 = sld [smem:[#allocation18_spill]]  ;;  %s2430_s20 = smov 0  }
  0x70   :  { %v1880_v3 = vpack.c.bf16 %v134_v1, %v133_v0  ;;  %1745 = vmatprep.mubr.msk.f32.mxu0 %vm142_vm1, %v131_v2  ;;  %v132_v4 = vld [vmem:[#allocation2 + $0x8] sm:$0xff] }
  0x72   :  { %1882 = vmatprep.subr.msk.bf16.mxu0 %vm1881_vm3, %v1880_v3 }
  0x73   :  { %1885 = vmatpush3.bf16.msk.msra.mxu0 %vm1881_vm3, %v1880_v3 }
  0x75   :  { %v1635_v5 = vld [vmem:[%s2671_s29] ss:$0 sm:$0xff] }
  0x76   :  { %1746 = vmatmul.mubr.msk.f32.vlgmr.msra.gmra.mrb[0].mxu0 %vm142_vm1, %v132_v4 }
 0x149   :  { %v1747_v6 = vpop.f32.mrb[0].mxu0 }
 0x14a   :  { %v225_v7 = vadd.f32 %v1747_v6, %v1635_v5  ;;  %v219_v8 = vpop.f32.mrb[1].mxu0 }
 0x14b   :  { %v220_v9 = vadd.f32 %v1635_v5, %v219_v8 }
 0x14c   :  { %v229_v10 = vmax.f32 %v225_v7, 0.0  }
 0x14d   :  { %v228_v11 = vmax.f32 %v220_v9, 0.0  }
 0x14e LB: > { %v2227_v12 = vmov 0.0   ;;  %s1673_s25 = sshll.u32 %s2215_s20, 7  ;;  %s2672_s9 = sld [smem:[#allocation19_spill]]  ;;  %vm271_vm4 = vcmask 523264   ;;  %v261_v37 = vlaneseq  ;;  %vm2228_vm5 = vmmov 0   ;;  %s2215_s20 = sphi %s2430_s20, %s235_s20   ;;  %v2211_v11 = vphi %v228_v11, %v2674_v11   ;;  %v2207_v10 = vphi %v229_v10, %v2673_v10  }
 0x14f   : > { %342 = vmatprep.mubr.f32.mxu0 %v2227_v12  ;;  %1748 = vmatprep.subr.mxu1 %v2227_v12  ;;  %s1641_s30 = sshll.u32 %s2215_s20, 1  ;;  %s2229_s19 = smov 64   ;;  %vm360_vm6 = vcmask 261120   ;;  %vm514_vm7 = vcmask 64512  }
 0x150   : > { %v262_v38 = vshrl.u32 %v261_v37, 7  ;;  %s258_s18 = scalar_lea.vmem %s2644_s4, %s1641_s30  ;;  %1750 = vmatprep.mubr.msk.f32.mxu1 %vm2228_vm5, %v2227_v12  ;;  %s2230_s1 = smov 32  }
 0x151   : > { %v259_v40 = vld [vmem:[%s258_s18] sm:$0x3]  ;;  %s2231_s23 = smov 96   ;;  %s1656_s24 = sshll.u32 %s2215_s20, 6 }
 0x152   : > { %v263_v39 = vsub.s32 0, %v262_v38  ;;  %v267_v43 = vsub.s32 1, %v262_v38  ;;  %s1026_s22 = scalar_lea.vmem %s2645_s5, %s1656_s24  ;;  %s1035_s29 = scalar_lea.vmem %s2646_s6, %s2215_s20 }
 0x153   : > { %s1173_s26 = scalar_lea.vmem [#allocation8], %s1656_s24  ;;  %s1126_s2 = scalar_lea.vmem %s2647_s7, %s2215_s20 }
 0x154   : > { %s240_s21 = scalar_lea.vmem %s2672_s9, %s1673_s25  ;;  %v264_v41 = vrot.slane %v259_v40, %v263_v39  ;;  %v268_v46 = vrot.slane %v259_v40, %v267_v43  ;;  %s1128_s0 = scalar_lea.vmem [#allocation7], %s2215_s20 }
 0x155   : > { %v242_v13 = vld [vmem:[%s240_s21 + $0x8] sm:$0xff]  ;;  %v244_v14 = vld [vmem:[%s240_s21 + $0x18] sm:$0xff]  ;;  %v241_v15 = vld [vmem:[%s240_s21] sm:$0xff]  ;;  %s1291_s3 = scalar_lea.vmem %s2652_s12, %s2215_s20  ;;  %s1376_s17 = scalar_lea.vmem %s2653_s13, %s2215_s20 }
 0x156   : > { %v1886_v16 = vpack.c.bf16 %v244_v14, %v242_v13  ;;  %v243_v17 = vld [vmem:[%s240_s21 + $0x10] sm:$0xff]  ;;  %v246_v18 = vld [vmem:[%s240_s21 + $0x28] sm:$0xff]  ;;  %v248_v19 = vld [vmem:[%s240_s21 + $0x38] sm:$0xff] }
 0x157   : > { %v1888_v20 = vpack.c.bf16 %v243_v17, %v241_v15  ;;  %v1890_v21 = vpack.c.bf16 %v248_v19, %v246_v18  ;;  %v245_v22 = vld [vmem:[%s240_s21 + $0x20] sm:$0xff]  ;;  %v247_v23 = vld [vmem:[%s240_s21 + $0x30] sm:$0xff]  ;;  %v250_v24 = vld [vmem:[%s240_s21 + $0x48] sm:$0xff] }
 0x158   : > { %1887 = vmatprep.subr.bf16.mxu0 %v1886_v16  ;;  %v252_v25 = vld [vmem:[%s240_s21 + $0x58] sm:$0xff]  ;;  %v1892_v26 = vpack.c.bf16 %v247_v23, %v245_v22  ;;  %v249_v28 = vld [vmem:[%s240_s21 + $0x40] sm:$0xff]  ;;  %v251_v29 = vld [vmem:[%s240_s21 + $0x50] sm:$0xff] }
 0x159   : > { %1889 = vmatpush1.bf16.msra.mxu0 %v1888_v20  ;;  %v1894_v27 = vpack.c.bf16 %v252_v25, %v250_v24  ;;  %v254_v30 = vld [vmem:[%s240_s21 + $0x68] sm:$0xff]  ;;  %v256_v31 = vld [vmem:[%s240_s21 + $0x78] sm:$0xff]  ;;  %v1896_v32 = vpack.c.bf16 %v251_v29, %v249_v28  ;;  %v253_v34 = vld [vmem:[%s240_s21 + $0x60] sm:$0xff] }
 0x15a   : > { %1891 = vmatprep.subr.bf16.mxu0 %v1890_v21  ;;  %v1898_v33 = vpack.c.bf16 %v256_v31, %v254_v30  ;;  %v255_v35 = vld [vmem:[%s240_s21 + $0x70] sm:$0xff]  ;;  %s2558_s21 = scalar_lea.vmem %s2651_s11, %s1673_s25 }
 0x15b   : > { %v1900_v36 = vpack.c.bf16 %v255_v35, %v253_v34 }
 0x15d   : > { %1893 = vmatpush1.bf16.msra.mxu0 %v1892_v26 }
 0x15e   : > { %1895 = vmatprep.subr.bf16.mxu0 %v1894_v27 }
 0x161   : > { %1897 = vmatpush1.bf16.msra.mxu0 %v1896_v32 }
 0x162   : > { %1899 = vmatprep.subr.bf16.mxu0 %v1898_v33 }
 0x165   : > { %1901 = vmatpush1.bf16.msra.mxu0 %v1900_v36 }
 0x166   : > { %1773 = vmatprep.subr.mxu0 %v2227_v12 }
 0x168   : > { %1642 = vmatmul.mubr.msk.f32.vlgmr.msra.gmra.mrb[0].mxu0 %vm271_vm4, %v2211_v11 }
 0x169   : > { %348 = vmatprep.mubr.f32.mxu0 %v2227_v12 }
 0x16c   : > { %1643 = vmatmul.mubr.msk.f32.gmra.mrb[2].mxu0 %vm271_vm4, %v2207_v10 }
 0x16d   : > { %1775 = vmatprep.mubr.msk.f32.mxu0 %vm2228_vm5, %v2227_v12 }
 0x23b   : > { %v344_v42 = vpop.f32.mrb[0].mxu0 }
 0x23c   : > { %v345_v44 = vadd.f32 %v344_v42, %v264_v41  ;;  %v346_v45 = vpop.f32.mrb[1].mxu0 }
 0x23d   : > { %v2472_v55 = vadd.f32 %v346_v45, %v268_v46 }
 0x23e   : > { %358 = vrot.lane.b32.xlu0 %v345_v44, %s2229_s19  ;;  %v355_v52 = vmul.f32 0.17677669, %v345_v44 }
 0x23f   : > { %v350_v47 = vpop.f32.mrb[2].mxu0 }
 0x240   : > { %v351_v48 = vadd.f32 %v350_v47, %v264_v41  ;;  %v352_v49 = vpop.f32.mrb[3].mxu0 }
 0x241   : > { %v2463_v50 = vadd.f32 %v352_v49, %v268_v46  ;;  %v1028_v49 = vld [vmem:[%s1026_s22 + $0x8] sm:$0xff] }
 0x242   : > { %437 = vrot.lane.b32.xlu0 %v351_v48, %s2229_s19  ;;  %v356_v54 = vmul.f32 0.17677669, %v351_v48 }
 0x2b0   : > { %v359_v51 = vpop.permute.xlu0 %358 }
 0x2b1   : > { %1749 = vmatpush3.xpose.msk.msra.mxu1 %vm360_vm6, %v359_v51 }
 0x2b2   : > { %1753 = vmatprep.subr.mxu1 %v2227_v12 }
 0x2b4   : > { %1751 = vmatmul.mubr.msk.f32.vlgmr.msra.gmra.mrb[0].mxu1 %vm360_vm6, %v355_v52  ;;  %v438_v53 = vpop.permute.xlu0 %437 }
 0x2b5   : > { %1754 = vmatpush3.xpose.msk.msra.mxu1 %vm360_vm6, %v438_v53  ;;  %1755 = vmatprep.mubr.msk.f32.mxu1 %vm2228_vm5, %v2227_v12 }
 0x2b6   : > { %1758 = vmatprep.subr.mxu1 %v2227_v12 }
 0x2b8   : > { %1756 = vmatmul.mubr.msk.f32.vlgmr.msra.gmra.mrb[2].mxu1 %vm360_vm6, %v356_v54 }
 0x2b9   : > { %1759 = vmatpush3.msra.mxu1 %v2472_v55  ;;  %1760 = vmatprep.mubr.msk.f32.mxu1 %vm2228_vm5, %v2227_v12 }
 0x2ba   : > { %1763 = vmatprep.subr.mxu1 %v2227_v12 }
 0x387   : > { %v432_v56 = vpop.f32.mrb[0].mxu1 }
 0x388   : > { %v1752_v57 = vpop.f32.mrb[1].mxu1  ;;  %v515_v58 = vsel %vm514_vm7, %v432_v56, -inf }
 0x389   : > { %516 = vmax.xlane.f32.xlu1 %v515_v58  ;;  %v1034_v58 = vld [vmem:[%s1026_s22 + $0x38] sm:$0xff] }
 0x38b   : > { %v510_v59 = vpop.f32.mrb[2].mxu1 }
 0x38c   : > { %v1757_v60 = vpop.f32.mrb[3].mxu1  ;;  %v518_v61 = vsel %vm514_vm7, %v510_v59, -inf }
 0x38d   : > { %519 = vmax.xlane.f32.xlu1 %v518_v61 }
 0x39e   : > { %685 = vrot.lane.b32.xlu1 %v345_v44, %s2230_s1 }
 0x3a2   : > { %763 = vrot.lane.b32.xlu1 %v351_v48, %s2230_s1  ;;  %v1027_v48 = vld [vmem:[%s1026_s22] sm:$0xff] }
 0x3a3   : > { %v1902_v51 = vpack.c.bf16 %v1028_v49, %v1027_v48  ;;  %v1284_v48 = vld [vmem:[%s2558_s21 + $0x48] sm:$0xff] }
 0x3a6   : > { %683 = vrot.lane.b32.xlu1 %v355_v52, %s2231_s23  ;;  %v1030_v52 = vld [vmem:[%s1026_s22 + $0x18] sm:$0xff] }
 0x416   : > { %v517_v62 = vpop.xlane.xlu1 %516 }
 0x417   : > { %v521_v63 = vsub.f32 %v432_v56, %v517_v62  ;;  %v1033_v56 = vld [vmem:[%s1026_s22 + $0x30] sm:$0xff] }
 0x419   : > { %v523_v0 = vmul.f32 1.442695, %v521_v63 }
 0x41a   : > { %v520_v1 = vpop.xlane.xlu1 %519 }
 0x41b   : > { %2021 = vpow2.f32 %v523_v0  ;;  %v522_v2 = vsub.f32 %v510_v59, %v520_v1  ;;  %v1914_v59 = vpack.c.bf16 %v1034_v58, %v1033_v56 }
 0x41d   : > { %v525_v3 = vmul.f32 1.442695, %v522_v2 }
 0x41e   : > { %v686_v4 = vpop.permute.xlu1 %685 }
 0x41f   : > { %2023 = vpow2.f32 %v525_v3 }
 0x422   : > { %v764_v5 = vpop.permute.xlu1 %763 }
 0x423   : > { %1774 = vmatpush3.xpose.msk.msra.mxu0 %vm360_vm6, %v764_v5 }
 0x424   : > { %1783 = vmatprep.subr.mxu0 %v2227_v12 }
 0x425   : > { %v2022_v6 = vpop.eup %2021 }
 0x426   : > { %v527_v7 = vsel %vm514_vm7, %v2022_v6, 0.0  ;;  %v684_v13 = vpop.permute.xlu1 %683 }
 0x427   : > { %528 = vadd.xlane.f32.xlu0 %v527_v7 }
 0x429   : > { %v2024_v8 = vpop.eup %2023 }
 0x42a   : > { %v530_v9 = vsel %vm514_vm7, %v2024_v8, 0.0 }
 0x42b   : > { %531 = vadd.xlane.f32.xlu1 %v530_v9 }
 0x43c   : > { %761 = vrot.lane.b32.xlu1 %v356_v54, %s2231_s23  ;;  %v1031_v54 = vld [vmem:[%s1026_s22 + $0x20] sm:$0xff] }
 0x4b4   : > { %v529_v14 = vpop.xlane.xlu0 %528 }
 0x4b5   : > { %2025 = vrcp.f32 %v529_v14 }
 0x4b8   : > { %v532_v15 = vpop.xlane.xlu1 %531 }
 0x4b9   : > { %2027 = vrcp.f32 %v532_v15 }
 0x4bc   : > { %v762_v16 = vpop.permute.xlu1 %761 }
 0x4bd   : > { %1776 = vmatmul.mubr.msk.f32.vlgmr.msra.gmra.mrb[4].mxu0 %vm360_vm6, %v762_v16 }
 0x4be   : > { %1785 = vmatprep.mubr.msk.f32.mxu0 %vm2228_vm5, %v2227_v12 }
 0x4bf   : > { %v2026_v17 = vpop.eup %2025 }
 0x4c0   : > { %v535_v18 = vmul.f32 %v2026_v17, %v2022_v6 }
 0x4c2   : > { %1761 = vmatmul.mubr.msk.f32.vlgmr.msra.gmra.mrb[4].mxu1 %vm514_vm7, %v535_v18 }
 0x4c3   : > { %v2028_v19 = vpop.eup %2027  ;;  %1764 = vmatpush3.msra.mxu1 %v2463_v50  ;;  %1765 = vmatprep.mubr.msk.f32.mxu1 %vm2228_vm5, %v2227_v12 }
 0x4c4   : > { %v536_v20 = vmul.f32 %v2028_v19, %v2024_v8  ;;  %1768 = vmatprep.subr.mxu1 %v2227_v12 }
 0x4c6   : > { %1766 = vmatmul.mubr.msk.f32.vlgmr.msra.gmra.mrb[6].mxu1 %vm514_vm7, %v536_v20 }
 0x4c7   : > { %1770 = vmatprep.mubr.msk.f32.mxu1 %vm2228_vm5, %v2227_v12 }
 0x4ca   : > { %1769 = vmatpush3.xpose.msk.msra.mxu1 %vm360_vm6, %v686_v4  ;;  %v1657_v4 = vld [vmem:[%s1035_s29] ss:$0 sm:$0xff] }
 0x4cb   : > { %1778 = vmatprep.subr.mxu1 %v2227_v12 }
 0x4cd   : > { %1771 = vmatmul.mubr.msk.f32.vlgmr.msra.gmra.mrb[8].mxu1 %vm360_vm6, %v684_v13 }
 0x4ce   : > { %1780 = vmatprep.mubr.msk.f32.mxu1 %vm2228_vm5, %v2227_v12 }
 0x590   : > { %v835_v21 = vpop.f32.mrb[4].mxu0 }
 0x591   : > { %v1777_v22 = vpop.f32.mrb[5].mxu0  ;;  %v842_v23 = vsel %vm514_vm7, %v835_v21, -inf }
 0x592   : > { %843 = vmax.xlane.f32.xlu1 %v842_v23 }
 0x595   : > { %v2506_v24 = vpop.f32.mrb[4].mxu1 }
 0x596   : > { %v1762_v25 = vpop.f32.mrb[5].mxu1 }
 0x597   : > { %v1175_v25 = vld [vmem:[%s1173_s26 + $0x8] sm:$0xff] }
 0x599   : > { %v2508_v26 = vpop.f32.mrb[6].mxu1 }
 0x59a   : > { %v1767_v27 = vpop.f32.mrb[7].mxu1 }
 0x59b   : > { %v1176_v27 = vld [vmem:[%s1173_s26 + $0x10] sm:$0xff] }
 0x5a0   : > { %v757_v28 = vpop.f32.mrb[8].mxu1 }
 0x5a1   : > { %v1772_v29 = vpop.f32.mrb[9].mxu1  ;;  %v839_v30 = vsel %vm514_vm7, %v757_v28, -inf }
 0x5a2   : > { %840 = vmax.xlane.f32.xlu0 %v839_v30  ;;  %v1178_v30 = vld [vmem:[%s1173_s26 + $0x20] sm:$0xff] }
 0x61f   : > { %v844_v31 = vpop.xlane.xlu1 %843 }
 0x620   : > { %v846_v32 = vsub.f32 %v835_v21, %v844_v31  ;;  %v1179_v31 = vld [vmem:[%s1173_s26 + $0x28] sm:$0xff] }
 0x622   : > { %v849_v33 = vmul.f32 1.442695, %v846_v32  ;;  %v1926_v32 = vpack.c.bf16 %v1179_v31, %v1178_v30 }
 0x624   : > { %2029 = vpow2.f32 %v849_v33  ;;  %v1180_v33 = vld [vmem:[%s1173_s26 + $0x30] sm:$0xff] }
 0x62e   : > { %v2030_v12 = vpop.eup %2029 }
 0x62f   : > { %v854_v34 = vsel %vm514_vm7, %v2030_v12, 0.0  ;;  %v841_v35 = vpop.xlane.xlu0 %840 }
 0x630   : > { %855 = vadd.xlane.f32.xlu0 %v854_v34  ;;  %v845_v36 = vsub.f32 %v757_v28, %v841_v35  ;;  %v1177_v28 = vld [vmem:[%s1173_s26 + $0x18] sm:$0xff]  ;;  %v1275_v35 = vld [vmem:[%s2558_s21] sm:$0xff] }
 0x631   : > { %v1922_v29 = vpack.c.bf16 %v1177_v28, %v1176_v27 }
 0x632   : > { %v847_v37 = vmul.f32 1.442695, %v845_v36  ;;  %v1276_v36 = vld [vmem:[%s2558_s21 + $0x8] sm:$0xff] }
 0x634   : > { %2031 = vpow2.f32 %v847_v37  ;;  %v1277_v37 = vld [vmem:[%s2558_s21 + $0x10] sm:$0xff] }
 0x63e   : > { %v2032_v38 = vpop.eup %2031 }
 0x63f   : > { %v851_v39 = vsel %vm514_vm7, %v2032_v38, 0.0 }
 0x646   : > { %862 = vrot.lane.b32.xlu0 %v2472_v55, %s2231_s23  ;;  %v1032_v55 = vld [vmem:[%s1026_s22 + $0x28] sm:$0xff] }
 0x647   : > { %v1910_v57 = vpack.c.bf16 %v1032_v55, %v1031_v54  ;;  %v1288_v54 = vld [vmem:[%s2558_s21 + $0x68] sm:$0xff] }
 0x665   : > { %852 = vadd.xlane.f32.xlu0 %v851_v39  ;;  %v1278_v39 = vld [vmem:[%s2558_s21 + $0x18] sm:$0xff] }
 0x67b   : > { %939 = vrot.lane.b32.xlu0 %v2463_v50, %s2231_s23  ;;  %v1029_v50 = vld [vmem:[%s1026_s22 + $0x10] sm:$0xff] }
 0x67c   : > { %v1906_v53 = vpack.c.bf16 %v1030_v52, %v1029_v50  ;;  %v1285_v50 = vld [vmem:[%s2558_s21 + $0x50] sm:$0xff] }
 0x6bd   : > { %v856_v40 = vpop.xlane.xlu0 %855 }
 0x6be   : > { %2033 = vrcp.f32 %v856_v40  ;;  %v1938_v40 = vpack.c.bf16 %v1278_v39, %v1277_v37 }
 0x6c1   : > { %v863_v41 = vpop.permute.xlu0 %862 }
 0x6c2   : > { %1779 = vmatpush3.msra.mxu1 %v863_v41  ;;  %v1279_v41 = vld [vmem:[%s2558_s21 + $0x20] sm:$0xff] }
 0x6c8   : > { %v2034_v43 = vpop.eup %2033 }
 0x6c9   : > { %v860_v44 = vmul.f32 %v2034_v43, %v2030_v12  ;;  %v1181_v12 = vld [vmem:[%s1173_s26 + $0x38] sm:$0xff] }
 0x6ca   : > { %v1930_v34 = vpack.c.bf16 %v1181_v12, %v1180_v33 }
 0x6f2   : > { %v853_v42 = vpop.xlane.xlu0 %852 }
 0x6f3   : > { %2035 = vrcp.f32 %v853_v42  ;;  %v1280_v42 = vld [vmem:[%s2558_s21 + $0x28] sm:$0xff] }
 0x6f4   : > { %v1942_v43 = vpack.c.bf16 %v1280_v42, %v1279_v41 }
 0x6f6   : > { %v940_v45 = vpop.permute.xlu0 %939 }
 0x6f7   : > { %1784 = vmatpush3.msra.mxu0 %v940_v45  ;;  %v1282_v45 = vld [vmem:[%s2558_s21 + $0x38] sm:$0xff] }
 0x6f8   : > { %1786 = vmatmul.mubr.msk.f32.vlgmr.msra.gmra.mrb[6].mxu0 %vm514_vm7, %v860_v44  ;;  %1903 = vmatprep.subr.bf16.mxu0 %v1902_v51  ;;  %v1281_v44 = vld [vmem:[%s2558_s21 + $0x30] sm:$0xff] }
 0x6f9   : > { %1905 = vmatpush3.bf16.msra.mxu0 %v1902_v51  ;;  %v1286_v51 = vld [vmem:[%s2558_s21 + $0x58] sm:$0xff] }
 0x6fa   : > { %1907 = vmatprep.subr.bf16.mxu0 %v1906_v53  ;;  %v1954_v52 = vpack.c.bf16 %v1286_v51, %v1285_v50 }
 0x6fd   : > { %v2036_v46 = vpop.eup %2035  ;;  %1909 = vmatpush3.bf16.msra.mxu0 %v1906_v53  ;;  %v1287_v53 = vld [vmem:[%s2558_s21 + $0x60] sm:$0xff] }
 0x6fe   : > { %v859_v47 = vmul.f32 %v2036_v46, %v2032_v38  ;;  %1911 = vmatprep.subr.bf16.mxu0 %v1910_v57  ;;  %v1934_v38 = vpack.c.bf16 %v1276_v36, %v1275_v35  ;;  %v1946_v46 = vpack.c.bf16 %v1282_v45, %v1281_v44  ;;  %v1958_v55 = vpack.c.bf16 %v1288_v54, %v1287_v53  ;;  %v1667_v44 = vld [vmem:[%s1376_s17] ss:$0 sm:$0xff] }
 0x700   : > { %1781 = vmatmul.mubr.msk.f32.vlgmr.msra.gmra.mrb[10].mxu1 %vm514_vm7, %v859_v47  ;;  %1935 = vmatprep.subr.bf16.mxu1 %v1934_v38  ;;  %v1283_v47 = vld [vmem:[%s2558_s21 + $0x40] sm:$0xff] }
 0x701   : > { %1913 = vmatpush3.bf16.msra.mxu0 %v1910_v57  ;;  %1937 = vmatpush3.bf16.msra.mxu1 %v1934_v38  ;;  %v1950_v49 = vpack.c.bf16 %v1284_v48, %v1283_v47 }
 0x702   : > { %1915 = vmatprep.subr.bf16.mxu0 %v1914_v59  ;;  %1939 = vmatprep.subr.bf16.mxu1 %v1938_v40 }
 0x705   : > { %1917 = vmatpush3.bf16.msra.mxu0 %v1914_v59  ;;  %1941 = vmatpush3.bf16.msra.mxu1 %v1938_v40 }
 0x706   : > { %1943 = vmatprep.subr.bf16.mxu1 %v1942_v43 }
 0x709   : > { %1945 = vmatpush3.bf16.msra.mxu1 %v1942_v43 }
 0x70a   : > { %1947 = vmatprep.subr.bf16.mxu1 %v1946_v46 }
 0x70d   : > { %1949 = vmatpush3.bf16.msra.mxu1 %v1946_v46 }
 0x70e   : > { %1951 = vmatprep.subr.bf16.mxu1 %v1950_v49 }
 0x711   : > { %1953 = vmatpush3.bf16.msra.mxu1 %v1950_v49 }
 0x712   : > { %1955 = vmatprep.subr.bf16.mxu1 %v1954_v52 }
 0x715   : > { %1957 = vmatpush3.bf16.msra.mxu1 %v1954_v52 }
 0x716   : > { %1959 = vmatprep.subr.bf16.mxu1 %v1958_v55 }
 0x719   : > { %1961 = vmatpush3.bf16.msra.mxu1 %v1958_v55 }
 0x7cb   : > { %v1011_v60 = vpop.f32.mrb[6].mxu0 }
 0x7cc   : > { %1019 = vrot.lane.b32.xlu1 %v1011_v60, %s2230_s1  ;;  %v1787_v61 = vpop.f32.mrb[7].mxu0 }
 0x7d3   : > { %v934_v62 = vpop.f32.mrb[10].mxu1 }
 0x7d4   : > { %1017 = vrot.lane.b32.xlu0 %v934_v62, %s2230_s1  ;;  %v1782_v63 = vpop.f32.mrb[11].mxu1  ;;  %s1182_s1 = scalar_lea.vmem %s2650_s10, %s2215_s20 }
 0x7d5   : > { %v1660_v63 = vld [vmem:[%s1126_s2] ss:$0 sm:$0xff] }
 0x83e   : > { %v1020_v0 = vpop.permute.xlu1 %1019 }
 0x83f   : > { %v1024_v3 = vsel %vm360_vm6, %v2508_v26, %v1020_v0 }
 0x846   : > { %v1018_v1 = vpop.permute.xlu0 %1017 }
 0x847   : > { %v1023_v2 = vsel %vm360_vm6, %v2506_v24, %v1018_v1  ;;  %v1174_v24 = vld [vmem:[%s1173_s26] sm:$0xff]  ;;  %s1378_s26 = scalar_lea.vmem %s2654_s14, %s2215_s20  ;;  %s235_s20 = sadd.s32 1, %s2215_s20  }
 0x848   : > { %1804 = vmatprep.mubr.msk.f32.mxu0 %vm271_vm4, %v1023_v2  ;;  %v1918_v26 = vpack.c.bf16 %v1175_v25, %v1174_v24  ;;  %v1661_v1 = vld [vmem:[%s1128_s0] ss:$0 sm:$0xff]  ;;  %p232_p12 = scmp.ge.s32.totalorder %s235_s20, 5  }
 0x849   : > { %1805 = vmatmul.mubr.msk.f32.vlgmr.msra.gmra.mrb[8].mxu0 %vm271_vm4, %v1024_v3  ;;  %v1668_v46 = vld [vmem:[%s1378_s26] ss:$0 sm:$0xff]  ;;  %vm2233_vm8 = vmmov (%p232_p12), 0   ;;  %vm1501_vm9 = vcmask (%p232_p12), 1041409   ;;  %s2675_s12 = sld [smem:[#allocation20_spill]] (%p232_p12)  ;;  %vm1575_vm10 = vcmask (%p232_p12), 1041408  }
 0x84a   : > { %1919 = vmatprep.subr.bf16.mxu0 %v1918_v26  ;;  %s2235_s13 = smov (%p232_p12), [#allocation11]  }
 0x84b   : > { %1921 = vmatpush3.bf16.msra.mxu0 %v1918_v26  ;;  %s1596_s14 = sshll.u32 (%p232_p12), %s2235_s13, 4  ;;  %s1597_s14 = int_to_ptr.vmem [resolvable:$true] %s1596_s14 }
 0x84c   : > { %1923 = vmatprep.subr.bf16.mxu0 %v1922_v29  ;;  %p2168_p0 = scmp.lt.s32.totalorder (%p232_p12), %s1597_s14, %s1597_s14 }
 0x84f   : > { %1925 = vmatpush3.bf16.msra.mxu0 %v1922_v29 }
 0x850   : > { %1927 = vmatprep.subr.bf16.mxu0 %v1926_v32 }
 0x853   : > { %1929 = vmatpush3.bf16.msra.mxu0 %v1926_v32 }
 0x854   : > { %1931 = vmatprep.subr.bf16.mxu0 %v1930_v34 }
 0x857   : > { %1933 = vmatpush3.bf16.msra.mxu0 %v1930_v34 }
 0x91c   : > { %v1806_v5 = vpop.f32.mrb[8].mxu0 }
 0x91d   : > { %v1121_v6 = vadd.f32 %v1806_v5, %v1657_v4  ;;  %v1115_v7 = vpop.f32.mrb[9].mxu0 }
 0x91e   : > { %v1116_v8 = vadd.f32 %v1657_v4, %v1115_v7 }
 0x91f   : > { %v1125_v9 = vadd.f32 %v2207_v10, %v1121_v6 }
 0x920   : > { %v1124_v13 = vadd.f32 %v2211_v11, %v1116_v8  ;;  %v1289_v8 = vld [vmem:[%s2558_s21 + $0x70] sm:$0xff] }
 0x921   : > { %v1133_v14 = vsel %vm271_vm4, %v1125_v9, 0.0 }
 0x922   : > { %1134 = vadd.xlane.f32.xlu1 %v1133_v14  ;;  %v1130_v15 = vsel %vm271_vm4, %v1124_v13, 0.0  ;;  %v1662_v14 = vld [vmem:[%s1182_s1] ss:$0 sm:$0xff] }
 0x923   : > { %1131 = vadd.xlane.f32.xlu0 %v1130_v15 }
 0x9af   : > { %v1135_v16 = vpop.xlane.xlu1 %1134 }
 0x9b0   : > { %v1138_v17 = vmul.f32 0.015625, %v1135_v16  ;;  %v1132_v18 = vpop.xlane.xlu0 %1131 }
 0x9b1   : > { %v1137_v19 = vmul.f32 0.015625, %v1132_v18 }
 0x9b2   : > { %v2541_v20 = vsub.f32 %v1125_v9, %v1138_v17  ;;  %v1290_v9 = vld [vmem:[%s2558_s21 + $0x78] sm:$0xff] }
 0x9b3   : > { %v2543_v21 = vsub.f32 %v1124_v13, %v1137_v19  ;;  %v1962_v13 = vpack.c.bf16 %v1290_v9, %v1289_v8  ;;  %v1488_v9 = vld [vmem:[#allocation10 + $0x20] sm:$0xff] (%p232_p12) }
 0x9b4   : > { %v1142_v22 = vmul.f32 %v2541_v20, %v2541_v20 }
 0x9b5   : > { %v1141_v10 = vmul.f32 %v2543_v21, %v2543_v21  ;;  %1963 = vmatprep.subr.bf16.mxu1 %v1962_v13 }
 0x9b6   : > { %v1146_v23 = vsel %vm271_vm4, %v1142_v22, 0.0  ;;  %1965 = vmatpush3.bf16.msra.mxu1 %v1962_v13  ;;  %v1489_v13 = vld [vmem:[#allocation10 + $0x28] sm:$0xff] (%p232_p12) }
 0x9b7   : > { %v1143_v11 = vsel %vm271_vm4, %v1141_v10, 0.0 }
 0x9b8   : > { %1144 = vadd.xlane.f32.xlu0 %v1143_v11 }
 0x9bc   : > { %1147 = vadd.xlane.f32.xlu0 %v1146_v23 }
 0xa45   : > { %v1145_v56 = vpop.xlane.xlu0 %1144 }
 0xa46   : > { %v1149_v57 = vmul.f32 0.015625, %v1145_v56 }
 0xa48   : > { %v1151_v58 = vadd.f32 1e-05, %v1149_v57 }
 0xa49   : > { %v1148_v59 = vpop.xlane.xlu0 %1147 }
 0xa4a   : > { %2037 = vrsqrt.f32 %v1151_v58  ;;  %v1150_v60 = vmul.f32 0.015625, %v1148_v59 }
 0xa4c   : > { %v1152_v61 = vadd.f32 1e-05, %v1150_v60 }
 0xa4e   : > { %2039 = vrsqrt.f32 %v1152_v61 }
 0xa54   : > { %v2038_v62 = vpop.eup %2037 }
 0xa55   : > { %v1155_v0 = vmul.f32 %v2038_v62, %v2543_v21  ;;  %v1666_v21 = vld [vmem:[%s1291_s3] ss:$0 sm:$0xff] }
 0xa57   : > { %v1163_v2 = vmul.f32 %v1660_v63, %v1155_v0 }
 0xa58   : > { %v2040_v3 = vpop.eup %2039 }
 0xa59   : > { %v1156_v4 = vmul.f32 %v2040_v3, %v2541_v20  ;;  %v1171_v5 = vadd.f32 %v1661_v1, %v1163_v2  ;;  %v1485_v2 = vld [vmem:[#allocation10 + $0x8] sm:$0xff] (%p232_p12)  ;;  %v1486_v3 = vld [vmem:[#allocation10 + $0x10] sm:$0xff] (%p232_p12) }
 0xa5b   : > { %v1164_v6 = vmul.f32 %v1660_v63, %v1156_v4  ;;  %1823 = vmatprep.mubr.msk.f32.mxu0 %vm271_vm4, %v1171_v5  ;;  %v2232_v4 = vmov (%p232_p12), 0.0|0.0  }
 0xa5c   :  { %1966 = vmatprep.subr.bf16.mxu0 (%p232_p12), %v2232_v4 }
 0xa5d   : > { %v1172_v7 = vadd.f32 %v1661_v1, %v1164_v6  ;;  %v1484_v1 = vld [vmem:[#allocation10] sm:$0xff] (%p232_p12)  ;;  %v1487_v6 = vld [vmem:[#allocation10 + $0x18] sm:$0xff] (%p232_p12) }
 0xa5e   :  { %v1970_v8 = vpack.c.bf16 (%p232_p12), %v1487_v6, %v1486_v3 }
 0xa5f   : > { %1824 = vmatmul.mubr.msk.f32.vlgmr.msra.gmra.mrb[10].mxu0 %vm271_vm4, %v1172_v7 }
 0xb32   : > { %v1825_v15 = vpop.f32.mrb[10].mxu0 }
 0xb33   : > { %v1268_v16 = vadd.f32 %v1825_v15, %v1662_v14  ;;  %v1262_v17 = vpop.f32.mrb[11].mxu0  ;;  %v1490_v15 = vld [vmem:[#allocation10 + $0x30] sm:$0xff] (%p232_p12) }
 0xb34   : > { %v1263_v18 = vadd.f32 %v1662_v14, %v1262_v17  ;;  %v1973_v14 = vpack.c.bf16 (%p232_p12), %v1489_v13, %v1488_v9 }
 0xb35   : > { %v1272_v20 = vmax.f32 %v1268_v16, 0.0  ;;  %v1491_v16 = vld [vmem:[#allocation10 + $0x38] sm:$0xff] (%p232_p12) }
 0xb36   : > { %v1271_v19 = vmax.f32 %v1263_v18, 0.0  ;;  %v1976_v17 = vpack.c.bf16 (%p232_p12), %v1491_v16, %v1490_v15 }
 0xb38   : > { %1858 = vmatprep.mubr.f32.mxu1 %v1271_v19 }
 0xb39   : > { %1859 = vmatmul.mubr.f32.vlgmr.msra.gmra.mrb[12].mxu1 %v1272_v20 }
 0xc0c   : > { %v1860_v10 = vpop.f32.mrb[12].mxu1 }
 0xc0d   : > { %v1365_v11 = vpop.f32.mrb[13].mxu1  ;;  %v1371_v22 = vadd.f32 %v1860_v10, %v1666_v21 }
 0xc0e   : > { %v1366_v23 = vadd.f32 %v1666_v21, %v1365_v11 }
 0xc0f   : > { %v1375_v26 = vadd.f32 %v1371_v22, %v1172_v7  ;;  %v2234_v7 = vmov (%p232_p12), 0.0  }
 0xc10   : > { %v1374_v24 = vadd.f32 %v1366_v23, %v1171_v5  ;;  %v1967_v5 = vpack.c.bf16 (%p232_p12), %v1485_v2, %v1484_v1  ;;  %1877 = vmatprep.mubr.msk.f32.mxu0 (%p232_p12), %vm2233_vm8, %v2234_v7  ;;  %v1669_v23 = vld [vmem:[%s2655_s15] ss:$0 sm:$0xff] (%p232_p12)  ;;  %s2163_s15 = scalar_lea.vmem (%p232_p12), %s1597_s14, 32 }
 0xc11   : > { %v1383_v27 = vsel %vm271_vm4, %v1375_v26, 0.0  ;;  %p2164_p13 = scmp.ne.s32.totalorder (%p232_p12), %s1597_s14, %s2163_s15  ;;  %p2169_p1 = scmp.lt.s32.totalorder (%p232_p12), %s2163_s15, %s2163_s15 }
 0xc12   : > { %v1380_v25 = vsel %vm271_vm4, %v1374_v24, 0.0  ;;  %1968 = vmatpush3.bf16.msra.mxu0 (%p232_p12), %v1967_v5 }
 0xc13   : > { %1381 = vadd.xlane.f32.xlu0 %v1380_v25  ;;  %1969 = vmatprep.subr.bf16.mxu0 (%p232_p12), %v2232_v4  ;;  %v1670_v25 = vld [vmem:[%s2656_s16] ss:$0 sm:$0xff] (%p232_p12)  ;;  %p2170_p2 = por (%p232_p12), %p2169_p1, %p2168_p0 }
 0xc15   :  { %p2171_p3 = pnand (%p232_p12), %p2170_p2, %p2164_p13 }
 0xc16   :  { %1971 = vmatpush3.bf16.msra.mxu0 (%p232_p12), %v1970_v8 }
 0xc17   : > { %1384 = vadd.xlane.f32.xlu0 %v1383_v27  ;;  %1972 = vmatprep.subr.bf16.mxu0 (%p232_p12), %v2232_v4 }
 0xc1a   :  { %1974 = vmatpush3.bf16.msra.mxu0 (%p232_p12), %v1973_v14 }
 0xc1b   :  { %1975 = vmatprep.subr.bf16.mxu0 (%p232_p12), %v2232_v4 }
 0xc1e   :  { %1977 = vmatpush3.bf16.msra.mxu0 (%p232_p12), %v1976_v17 }
 0xca0   : > { %v1382_v28 = vpop.xlane.xlu0 %1381 }
 0xca1   : > { %v1386_v29 = vmul.f32 0.015625, %v1382_v28 }
 0xca3   : > { %v1388_v30 = vsub.f32 %v1374_v24, %v1386_v29 }
 0xca4   : > { %v1385_v31 = vpop.xlane.xlu0 %1384 }
 0xca5   : > { %v1387_v32 = vmul.f32 0.015625, %v1385_v31  ;;  %v1390_v33 = vmul.f32 %v1388_v30, %v1388_v30 }
 0xca7   : > { %v1389_v12 = vsub.f32 %v1375_v26, %v1387_v32  ;;  %v1392_v34 = vsel %vm271_vm4, %v1390_v33, 0.0 }
 0xca8   : > { %1393 = vadd.xlane.f32.xlu0 %v1392_v34 }
 0xca9   : > { %v1391_v35 = vmul.f32 %v1389_v12, %v1389_v12 }
 0xcab   : > { %v1395_v36 = vsel %vm271_vm4, %v1391_v35, 0.0 }
 0xcac   : > { %1396 = vadd.xlane.f32.xlu1 %v1395_v36 }
 0xd35   : > { %v1394_v37 = vpop.xlane.xlu0 %1393 }
 0xd36   : > { %v1398_v38 = vmul.f32 0.015625, %v1394_v37 }
 0xd38   : > { %v1400_v39 = vadd.f32 1e-05, %v1398_v38 }
 0xd39   : > { %v1397_v40 = vpop.xlane.xlu1 %1396 }
 0xd3a   : > { %2041 = vrsqrt.f32 %v1400_v39  ;;  %v1399_v41 = vmul.f32 0.015625, %v1397_v40 }
 0xd3c   : > { %v1401_v42 = vadd.f32 1e-05, %v1399_v41 }
 0xd3e   : > { %2043 = vrsqrt.f32 %v1401_v42 }
 0xd44   : > { %v2042_v43 = vpop.eup %2041 }
 0xd45   : > { %v1404_v45 = vmul.f32 %v2042_v43, %v1388_v30 }
 0xd47   : > { %v1412_v47 = vmul.f32 %v1667_v44, %v1404_v45 }
 0xd48   : > { %v2044_v48 = vpop.eup %2043 }
 0xd49   : > { %v1420_v49 = vadd.f32 %v1668_v46, %v1412_v47   ;;  %v1405_v50 = vmul.f32 %v2044_v48, %v1389_v12  ;;  %234 = sbr.rel (!%p232_p12) target bundleno = 334 (0x14e), region = 135  ;;  %v1671_v48 = vld [vmem:[%s2675_s12] ss:$0 sm:$0xff] (%p232_p12) }
 0xd4b   : > { %v1413_v51 = vmul.f32 %v1667_v44, %v1405_v50  ;;  %v2674_v11 = vmov %v1420_v49  ;;  %v1425_v53 = vsel (%p232_p12), %vm271_vm4, %v1420_v49, 0.0 }
 0xd4c   :  { %1426 = vadd.xlane.f32.xlu0 (%p232_p12), %v1425_v53 }
 0xd4d   : > { %v1421_v52 = vadd.f32 %v1668_v46, %v1413_v51  }
 0xd4f   : > { %v2673_v10 = vmov %v1421_v52  ;;  %v1428_v54 = vsel (%p232_p12), %vm271_vm4, %v1421_v52, 0.0 }
 0xd50   :  { %1429 = vadd.xlane.f32.xlu0 %v1428_v54 }
 0xdd9   :  { %v1427_v55 = vpop.xlane.xlu0 %1426 }
 0xdda   :  { %v1432_v56 = vmul.f32 0.015625, %v1427_v55 }
 0xddc   :  { %v1434_v57 = vsub.f32 %v1420_v49, %v1432_v56 }
 0xddd   :  { %v1430_v58 = vpop.xlane.xlu0 %1429 }
 0xdde   :  { %v1433_v59 = vmul.f32 0.015625, %v1430_v58  ;;  %v1436_v60 = vmul.f32 %v1434_v57, %v1434_v57 }
 0xde0   :  { %v1435_v61 = vsub.f32 %v1421_v52, %v1433_v59  ;;  %v1438_v62 = vsel %vm271_vm4, %v1436_v60, 0.0 }
 0xde1   :  { %1439 = vadd.xlane.f32.xlu1 %v1438_v62 }
 0xde2   :  { %v1437_v63 = vmul.f32 %v1435_v61, %v1435_v61 }
 0xde4   :  { %v1441_v0 = vsel %vm271_vm4, %v1437_v63, 0.0 }
 0xde5   :  { %1442 = vadd.xlane.f32.xlu1 %v1441_v0 }
 0xe6e   :  { %v1440_v18 = vpop.xlane.xlu1 %1439 }
 0xe6f   :  { %v1444_v19 = vmul.f32 0.015625, %v1440_v18 }
 0xe71   :  { %v1446_v20 = vadd.f32 1e-05, %v1444_v19 }
 0xe72   :  { %v1443_v21 = vpop.xlane.xlu1 %1442 }
 0xe73   :  { %2045 = vrsqrt.f32 %v1446_v20  ;;  %v1445_v10 = vmul.f32 0.015625, %v1443_v21 }
 0xe75   :  { %v1447_v11 = vadd.f32 1e-05, %v1445_v10 }
 0xe77   :  { %2047 = vrsqrt.f32 %v1447_v11 }
 0xe7d   :  { %v2046_v22 = vpop.eup %2045 }
 0xe7e   :  { %v1450_v24 = vmul.f32 %v2046_v22, %v1434_v57 }
 0xe80   :  { %v1458_v26 = vmul.f32 %v1669_v23, %v1450_v24 }
 0xe81   :  { %v2048_v27 = vpop.eup %2047 }
 0xe82   :  { %v1451_v28 = vmul.f32 %v2048_v27, %v1435_v61  ;;  %v1466_v29 = vadd.f32 %v1670_v25, %v1458_v26 }
 0xe84   :  { %v1459_v30 = vmul.f32 %v1669_v23, %v1451_v28  ;;  %v1468_v31 = vsel %vm271_vm4, %v1466_v29, -inf }
 0xe85   :  { %v1469_v32 = vrot.slane %v1468_v31, 4 }
 0xe86   :  { %v1467_v33 = vadd.f32 %v1670_v25, %v1459_v30 }
 0xe87   :  { %v1470_v12 = vmax.f32 %v1468_v31, %v1469_v32 }
 0xe88   :  { %v1475_v34 = vsel %vm271_vm4, %v1467_v33, -inf }
 0xe89   :  { %v1471_v35 = vrot.slane %v1470_v12, 2  ;;  %v1476_v36 = vrot.slane %v1475_v34, 4 }
 0xe8b   :  { %v1472_v37 = vmax.f32 %v1470_v12, %v1471_v35  ;;  %v1477_v38 = vmax.f32 %v1475_v34, %v1476_v36 }
 0xe8d   :  { %v1473_v39 = vrot.slane %v1472_v37, 1  ;;  %v1478_v40 = vrot.slane %v1477_v38, 2 }
 0xe8f   :  { %v1479_v41 = vmax.f32 %v1477_v38, %v1478_v40  ;;  %v1474_v42 = vmax.f32 %v1472_v37, %v1473_v39 }
 0xe91   :  { %v1480_v43 = vrot.slane %v1479_v41, 1  ;;  %v1482_v45 = vmax.f32 %v1474_v42, 0.0 }
 0xe93   :  { %v1481_v44 = vmax.f32 %v1479_v41, %v1480_v43 }
 0xe95   :  { %v1483_v46 = vmax.f32 %v1481_v44, 0.0 }
 0xe97   :  { %v1502_v47 = vsel %vm1501_vm9, %v1483_v46, %v1482_v45 }
 0xe98   :  { %1878 = vmatmul.mubr.msk.f32.vlgmr.msra.gmra.mrb[0].mxu0 %vm271_vm4, %v1502_v47 }
 0xf6b   :  { %v1571_v49 = vpop.f32.mrb[0].mxu0 }
 0xf6c   :  { %v1572_v50 = vadd.f32 %v1671_v48, %v1571_v49  ;;  %v1879_v51 = vpop.f32.mrb[1].mxu0 }
 0xf6e   :  { %v1576_v52 = vsel %vm1575_vm10, %v1572_v50, -inf }
 0xf6f   :  { %1577 = vmax.xlane.f32.xlu0 %v1576_v52 }
 0xffc   :  { %v1578_v53 = vpop.xlane.xlu0 %1577 }
 0xffd   :  { %v1579_v54 = vsub.f32 %v1572_v50, %v1578_v53 }
 0xfff   :  { %v1580_v55 = vmul.f32 1.442695, %v1579_v54 }
0x1001   :  { %2049 = vpow2.f32 %v1580_v55 }
0x100b   :  { %v2050_v56 = vpop.eup %2049 }
0x100c   :  { %v1582_v57 = vsel %vm1575_vm10, %v2050_v56, 0.0 }
0x100d   :  { %1583 = vadd.xlane.f32.xlu1 %v1582_v57 }
0x109a   :  { %v1584_v58 = vpop.xlane.xlu1 %1583 }
0x109b   :  { %2051 = vlog2.f32 %v1584_v58 }
0x10a5   :  { %v2052_v59 = vpop.eup %2051 }
0x10a6   :  { %v1586_v60 = vmul.f32 0.6931472, %v2052_v59 }
0x10a8   :  { %v1587_v61 = vadd.f32 %v1586_v60, %v1578_v53 }
0x10aa   :  { %v1588_v62 = vsub.f32 %v1572_v50, %v1587_v61 }
0x10ac   :  { %1589 = vst [vmem:[#allocation11] sm:$0x3] %v1588_v62 }
0x10ad   :  { %2174 = shalt.err (!%p2171_p3)
}
0x10ae   :  { %s2676_s27 = sld [smem:[#allocation21_spill]] }
0x10b4   :  { %s2175_s9 = scalar_lea.hbm %s2676_s27, 32 }
0x10b5   :  { %p2176_p4 = scmp.ne.s32.totalorder %s2676_s27, %s2175_s9  ;;  %p2179_p5 = scmp.lt.u32.totalorder %s2175_s9, %s2676_s27 }
0x10b7   :  { %p2181_p6 = pnand %p2179_p5, %p2176_p4 }
0x10b9   :  { %2184 = shalt.err (!%p2181_p6)
}
0x10ba   :  { %1599 = dma.vmem_to_hbm [thread:$0]  %s1597_s14, 32, %s2676_s27, [#allocation4]  }
0x10bb   :  { %2203 = dma.done.wait [#allocation4], 32  }
0x10bc   :  { %2204 = vsyncadd [#allocation4], 4294967264 }
0x10bd   :  { %1603 = vsyncpa [#allocation3], 1 }
0x10be   :  { %1604 = vsyncpa [#allocation6], 1 }
0x10bf   :  { %1605 = vsyncpa [#allocation9], 1 }
0x10c0   :  { %1606 = vsyncpa [#allocation4], 1 }

</bundles_post_ra>
